<compile_context>
chip_gen: v5e
topology: v5e:2x2
jax: 0.10.0
libtpu: 0.0.40
codegen_flags: <defaults>
</compile_context>

<pallas_src>
import jax
import jax.numpy as jnp
from jax import lax
from jax.experimental import pallas as pl
from jax.experimental.pallas import tpu as pltpu


# ---------------------------------------------------------------------------
# chip-generation-aware knobs
# ---------------------------------------------------------------------------

def _device_kind():
    try:
        return jax.devices()[0].device_kind.lower()
    except Exception:
        return ""


_KIND = _device_kind()
_IS_V7X = "v7" in _KIND                 # 2 TensorCores/chip, 64 MiB VMEM per TC
# v5e / v6e: single TC, 128 MiB physical VMEM -> raise the scoped limit and use
# bigger matmul tiles; keep smaller budgets on v7x.
_VMEM_LIMIT = (48 << 20) if _IS_V7X else (96 << 20)
_MM_TM_CAP = 256 if _IS_V7X else 512
_MM_TN_CAP = 512 if _IS_V7X else 1024
_MM_TK_CAP = 512


def _probe_single_buffer_weights():
    """Run a tiny kernel to check pipeline_mode=pl.Buffered(1) works here."""
    if not hasattr(pl, "Buffered"):
        return False
    try:
        spec = pl.BlockSpec((8, 128), lambda i: (0, 0),
                            pipeline_mode=pl.Buffered(1))

        def _copy(x_ref, o_ref):
            o_ref[...] = x_ref[...]

        out = pl.pallas_call(
            _copy,
            out_shape=jax.ShapeDtypeStruct((16, 128), jnp.float32),
            grid_spec=pltpu.PrefetchScalarGridSpec(
                num_scalar_prefetch=0, grid=(2,),
                in_specs=[spec],
                out_specs=pl.BlockSpec((8, 128), lambda i: (i, 0))),
        )(jnp.ones((8, 128), jnp.float32))
        jax.block_until_ready(out)
        return True
    except Exception:
        return False


_SINGLE_BUFFER_OK = _probe_single_buffer_weights()


def _const_weight_spec(shape, index_map):
    """BlockSpec for a grid-invariant weight block; single-buffer if supported."""
    if _SINGLE_BUFFER_OK:
        return pl.BlockSpec(shape, index_map, pipeline_mode=pl.Buffered(1))
    return pl.BlockSpec(shape, index_map)


# ---------------------------------------------------------------------------
# small helpers
# ---------------------------------------------------------------------------

def _round_up(x, m):
    return (x + m - 1) // m * m


def _pick_div_128(dim, cap):
    """Largest multiple of 128 dividing `dim` (itself a multiple of 128), <= cap."""
    if dim <= cap:
        return dim
    t = (cap // 128) * 128
    while t > 128:
        if dim % t == 0:
            return t
        t -= 128
    return 128


def _pick_div(dim, cap):
    """Largest divisor of `dim` that is <= cap (used for the time-slab size)."""
    if dim <= cap:
        return dim
    for t in range(cap, 0, -1):
        if dim % t == 0:
            return t
    return 1


def _pad_gate_matrix(w, h, h_pad, d, d_pad):
    """(4h, d) -> (4*h_pad, d_pad), zero-padding each of the 4 gate blocks."""
    w4 = w.reshape(4, h, d)
    w4 = jnp.pad(w4, ((0, 0), (0, h_pad - h), (0, d_pad - d)))
    return w4.reshape(4 * h_pad, d_pad)


def _pad_gate_bias(b, h, h_pad):
    b4 = b.reshape(4, h)
    b4 = jnp.pad(b4, ((0, 0), (0, h_pad - h)))
    return b4.reshape(4 * h_pad)


def _sigmoid(x):
    # one EUP op (tanh) instead of exp + divide
    return 0.5 * (jnp.tanh(0.5 * x) + 1.0)


# ---------------------------------------------------------------------------
# Kernel A: tiled matmul + bias (tied output projection), bf16 in / f32 out
# ---------------------------------------------------------------------------

def matmul_bias_kernel(a_ref, w_ref, b_ref, o_ref, acc_ref):
    k = pl.program_id(2)

    @pl.when(k == 0)
    def _():
        acc_ref[...] = jnp.zeros_like(acc_ref)

    acc_ref[...] += jnp.dot(a_ref[...], w_ref[...],
                            preferred_element_type=jnp.float32)

    @pl.when(k == pl.num_programs(2) - 1)
    def _():
        o_ref[...] = (acc_ref[...] + b_ref[...]).astype(o_ref.dtype)


def matmul_bias(a, w, bias):
    """a:(M,K) bf16, w:(K,N) bf16 (K,N multiples of 128), bias:(1,N) f32 -> (M,N) f32."""
    M, K = a.shape
    _, N = w.shape
    tm = min(_MM_TM_CAP, _round_up(M, 8))
    tn = _pick_div_128(N, _MM_TN_CAP)
    tk = _pick_div_128(K, _MM_TK_CAP)
    # cdiv grid over M: the last partial M-block is masked on writeback, so no
    # awkward divisor search / no extra pad copy of the activation is needed.
    grid = (pl.cdiv(M, tm), N // tn, K // tk)

    return pl.pallas_call(
        matmul_bias_kernel,
        out_shape=jax.ShapeDtypeStruct((M, N), jnp.float32),
        grid_spec=pltpu.PrefetchScalarGridSpec(
            num_scalar_prefetch=0,
            grid=grid,
            in_specs=[
                pl.BlockSpec((tm, tk), lambda i, j, k: (i, k)),
                pl.BlockSpec((tk, tn), lambda i, j, k: (k, j)),
                pl.BlockSpec((1, tn), lambda i, j, k: (0, j)),
            ],
            out_specs=pl.BlockSpec((tm, tn), lambda i, j, k: (i, j)),
            scratch_shapes=[pltpu.VMEM((tm, tn), jnp.float32)],
        ),
        compiler_params=pltpu.CompilerParams(
            dimension_semantics=("parallel", "parallel", "arbitrary"),
            vmem_limit_bytes=_VMEM_LIMIT),
    )(a, w, bias)


# ---------------------------------------------------------------------------
# Kernel B: fused input projection + sequential LSTM recurrence + out-dropout
# ---------------------------------------------------------------------------

def lstm_fused_kernel(x_ref, w_ih_ref, w_hh_ref, b_ref, mask_ref, h_out_ref,
                      h_scr, c_scr, g_scr):
    """One grid step handles a (ts, bb, E) slab of embedded inputs.

    x_ref    : (ts, bb, E)   bf16 embedded (and emb-dropout-masked) inputs
    w_ih_ref : (E, 4H)       bf16, grid-invariant (single-buffered)
    w_hh_ref : (H, 4H)       bf16, grid-invariant (single-buffered)
    b_ref    : (1, 4H)       f32  combined b_ih + b_hh
    mask_ref : (bb, H)       f32  variational output-dropout mask (ones in eval)
    h_out_ref: (ts, bb, H)   bf16 masked hidden states (feeds output projection)
    h_scr/c_scr : (bb, H)    f32  recurrent carries, persist across the time grid
    g_scr    : (ts, bb, 4H)  f32  input-projection gates for this slab
    """
    ti = pl.program_id(1)

    @pl.when(ti == 0)
    def _():
        h_scr[...] = jnp.zeros_like(h_scr)
        c_scr[...] = jnp.zeros_like(c_scr)

    ts, bb, Ep = x_ref.shape
    Hp = h_scr.shape[1]

    # Hoisted input projection for the whole slab: (ts*bb, E) @ (E, 4H) + b.
    # M = ts*bb rows -> good MXU utilization; gates never round-trip HBM.
    x2 = x_ref[...].reshape(ts * bb, Ep)                       # bf16
    gin = jnp.dot(x2, w_ih_ref[...], preferred_element_type=jnp.float32)
    g_scr[...] = gin.reshape(ts, bb, 4 * Hp) + b_ref[...]

    w_hh = w_hh_ref[...]                                        # bf16, resident
    mask = mask_ref[...]                                        # f32

    def step(s, carry):
        h, c = carry                                            # f32 carries
        g = g_scr[s] + jnp.dot(h.astype(w_hh.dtype), w_hh,
                               preferred_element_type=jnp.float32)
        # gate slices at 128-aligned offsets (Hp is a multiple of 128)
        i_g = _sigmoid(g[:, 0 * Hp:1 * Hp])
        f_g = _sigmoid(g[:, 1 * Hp:2 * Hp])
        g_g = jnp.tanh(g[:, 2 * Hp:3 * Hp])
        o_g = _sigmoid(g[:, 3 * Hp:4 * Hp])
        c = f_g * c + i_g * g_g
        h = o_g * jnp.tanh(c)
        # variational out-dropout fused into writeback; carry stays unmasked
        h_out_ref[s] = (h * mask).astype(h_out_ref.dtype)
        return h, c

    # bounded unroll (8) keeps vreg pressure / spills in check at large H
    h, c = lax.fori_loop(0, ts, step, (h_scr[...], c_scr[...]),
                         unroll=min(ts, 8))
    h_scr[...] = h
    c_scr[...] = c


def lstm_recurrence(x, w_ih_t, w_hh_t, bias_g, out_mask, *, ts_cap=16):
    """x:(T,B_pad,E_pad) bf16 -> masked hidden states (T,B_pad,H_pad) bf16."""
    T, B_pad, E_pad = x.shape
    H_pad, G = w_hh_t.shape

    # Batch rows are independent: shard them across TensorCores only on
    # multi-TC chips (v7x).  On single-TC v5e/v6e splitting just serializes
    # the grid and thins the per-step matmul.
    if _IS_V7X and B_pad >= 16 and B_pad % 16 == 0:
        bb = B_pad // 2
    else:
        bb = B_pad
    ts = _pick_div(T, ts_cap)            # timesteps per grid step
    grid = (B_pad // bb, T // ts)

    return pl.pallas_call(
        lstm_fused_kernel,
        out_shape=jax.ShapeDtypeStruct((T, B_pad, H_pad), jnp.bfloat16),
        grid_spec=pltpu.PrefetchScalarGridSpec(
            num_scalar_prefetch=0,
            grid=grid,
            in_specs=[
                pl.BlockSpec((ts, bb, E_pad), lambda bi, ti: (ti, bi, 0)),
                _const_weight_spec((E_pad, G), lambda bi, ti: (0, 0)),
                _const_weight_spec((H_pad, G), lambda bi, ti: (0, 0)),
                pl.BlockSpec((1, G), lambda bi, ti: (0, 0)),
                pl.BlockSpec((bb, H_pad), lambda bi, ti: (bi, 0)),
            ],
            out_specs=pl.BlockSpec((ts, bb, H_pad), lambda bi, ti: (ti, bi, 0)),
            scratch_shapes=[
                pltpu.VMEM((bb, H_pad), jnp.float32),     # h carry
                pltpu.VMEM((bb, H_pad), jnp.float32),     # c carry
                pltpu.VMEM((ts, bb, G), jnp.float32),     # slab input-proj gates
            ],
        ),
        compiler_params=pltpu.CompilerParams(
            dimension_semantics=("parallel", "arbitrary"),
            vmem_limit_bytes=_VMEM_LIMIT),
    )(x, w_ih_t, w_hh_t, bias_g, out_mask)


# ---------------------------------------------------------------------------
# Parameter preparation (load time) + forward pass
# ---------------------------------------------------------------------------

def prepare_params(params):
    """One-time padding / transposition / bf16 casting, hoisted out of the
    per-call forward so the big weight copies never recur."""
    emb_w = params["embedding"]          # (V, E) -- also the tied output weight
    w_ih = params["w_ih"]                # (4H, E) PyTorch layout, gates [i,f,g,o]
    w_hh = params["w_hh"]                # (4H, H)
    b_ih, b_hh, b_out = params["b_ih"], params["b_hh"], params["b_out"]

    V, E = emb_w.shape
    H = w_hh.shape[1]
    if E != H:
        raise ValueError("weight tying requires emb_size == hidden_size")

    H_pad = _round_up(H, 128)
    E_pad = H_pad
    V_pad = _round_up(V, 128)

    emb_pad = jnp.pad(emb_w, ((0, V_pad - V), (0, E_pad - E)))
    prep = {
        "emb_table": emb_pad.astype(jnp.bfloat16),                # (V_pad, E_pad)
        "emb_out_t": emb_pad.T.astype(jnp.bfloat16),              # (E_pad, V_pad)
        "w_ih_t": _pad_gate_matrix(w_ih, H, H_pad, E, E_pad).T.astype(jnp.bfloat16),
        "w_hh_t": _pad_gate_matrix(w_hh, H, H_pad, H, H_pad).T.astype(jnp.bfloat16),
        "bias_g": _pad_gate_bias(b_ih + b_hh, H, H_pad).reshape(1, 4 * H_pad),
        "b_out": jnp.pad(b_out, (0, V_pad - V)).reshape(1, V_pad),
    }
    dims = dict(V=V, E=E, H=H, V_pad=V_pad, E_pad=E_pad, H_pad=H_pad)
    return prep, dims


def make_lm_forward(params):
    """Returns a jitted forward(tokens, emb_mask=None, out_mask=None)."""
    prep, dims = prepare_params(params)
    V, E, H = dims["V"], dims["E"], dims["H"]
    V_pad, E_pad, H_pad = dims["V_pad"], dims["E_pad"], dims["H_pad"]

    @jax.jit
    def forward(tokens, emb_mask=None, out_mask=None):
        """tokens: (B, T) int32 -> logits (B, V, T) f32 (matches PyTorch).

        emb_mask (B, E) / out_mask (B, H): variational dropout masks that
        already include the 1/(1-p) scaling; None == eval mode."""
        B, T = tokens.shape
        B_pad = _round_up(B, 8)

        # embedding gather on the pre-padded bf16 table; batch padding lands on
        # the tiny int token array, not on the (T,B,E) float activation
        tok = jnp.pad(tokens, ((0, B_pad - B), (0, 0)))          # pad rows w/ token 0
        x = jnp.take(prep["emb_table"], tok.T, axis=0)           # (T, B_pad, E_pad) bf16
        if emb_mask is not None:
            m_e = jnp.pad(emb_mask, ((0, B_pad - B), (0, E_pad - E)),
                          constant_values=1.0)
            x = (x * m_e[None]).astype(jnp.bfloat16)             # same mask every t

        if out_mask is not None:
            m_o = jnp.pad(out_mask, ((0, B_pad - B), (0, H_pad - H)),
                          constant_values=1.0)
        else:
            m_o = jnp.ones((B_pad, H_pad), jnp.float32)

        # fused input projection + sequential recurrence + out-dropout
        h_seq = lstm_recurrence(x, prep["w_ih_t"], prep["w_hh_t"],
                                prep["bias_g"], m_o)             # (T,B_pad,H_pad) bf16

        # tied output projection: logits = h @ W_emb^T + b_out
        logits = matmul_bias(h_seq.reshape(T * B_pad, H_pad),
                             prep["emb_out_t"], prep["b_out"])   # (T*B_pad, V_pad) f32
        logits = logits.reshape(T, B_pad, V_pad)

        # TODO(synk): have the loss consume (T, B, V) directly to skip this full
        # HBM pass over the largest tensor (PyTorch returns (B, V, T)).
        return jnp.transpose(logits[:, :B, :V], (1, 2, 0))

    return forward


# ---------------------------------------------------------------------------
# Pure-JAX f32 reference (lax.scan) for numerical validation
# ---------------------------------------------------------------------------

def reference_forward(tokens, params, emb_mask=None, out_mask=None):
    emb_w = params["embedding"]
    w_ih, w_hh = params["w_ih"], params["w_hh"]
    b_ih, b_hh, b_out = params["b_ih"], params["b_hh"], params["b_out"]
    B, T = tokens.shape
    H = w_hh.shape[1]

    emb = jnp.take(emb_w, tokens, axis=0)                 # (B, T, E)
    if emb_mask is not None:
        emb = emb * emb_mask[:, None, :]

    def step(carry, x_t):
        h, c = carry
        gates = x_t @ w_ih.T + b_ih + h @ w_hh.T + b_hh
        i = jax.nn.sigmoid(gates[:, 0 * H:1 * H])
        f = jax.nn.sigmoid(gates[:, 1 * H:2 * H])
        g = jnp.tanh(gates[:, 2 * H:3 * H])
        o = jax.nn.sigmoid(gates[:, 3 * H:4 * H])
        c = f * c + i * g
        h = o * jnp.tanh(c)
        return (h, c), h

    h0 = jnp.zeros((B, H), jnp.float32)
    (_, _), hs = lax.scan(step, (h0, h0), jnp.transpose(emb, (1, 0, 2)))
    rnn_out = jnp.transpose(hs, (1, 0, 2))                # (B, T, H)
    if out_mask is not None:
        rnn_out = rnn_out * out_mask[:, None, :]
    logits = rnn_out @ emb_w.T + b_out                    # tied weights
    return jnp.transpose(logits, (0, 2, 1))               # (B, V, T)


# ---------------------------------------------------------------------------
# Parameter init (matches the PyTorch module's layers)
# ---------------------------------------------------------------------------

def init_params(key, vocab_size, emb_size, hidden_size, pad_index=0):
    assert emb_size == hidden_size, "weight tying requires emb_size == hidden_size"
    k = jax.random.split(key, 6)
    s_e = 1.0 / jnp.sqrt(emb_size)
    s_h = 1.0 / jnp.sqrt(hidden_size)
    emb_w = jax.random.uniform(k[0], (vocab_size, emb_size), jnp.float32, -s_e, s_e)
    emb_w = emb_w.at[pad_index].set(0.0)   # padding_idx row is zero
    return {
        "embedding": emb_w,
        "w_ih": jax.random.uniform(k[1], (4 * hidden_size, emb_size), jnp.float32, -s_h, s_h),
        "w_hh": jax.random.uniform(k[2], (4 * hidden_size, hidden_size), jnp.float32, -s_h, s_h),
        "b_ih": jax.random.uniform(k[3], (4 * hidden_size,), jnp.float32, -s_h, s_h),
        "b_hh": jax.random.uniform(k[4], (4 * hidden_size,), jnp.float32, -s_h, s_h),
        "b_out": jax.random.uniform(k[5], (vocab_size,), jnp.float32, -s_h, s_h),
    }


if __name__ == "__main__":
    B, T = 2, 8
    EMB = HID = 32
    VOCAB = 64
    PAD = 0

    key = jax.random.PRNGKey(0)
    pkey, tkey, mkey1, mkey2 = jax.random.split(key, 4)
    params = init_params(pkey, VOCAB, EMB, HID, pad_index=PAD)

    tokens = jax.random.randint(tkey, (B, T), 0, VOCAB, dtype=jnp.int32)
    tokens = tokens.at[0, -2:].set(PAD)   # include some padding tokens

    forward = make_lm_forward(params)

    # bf16 streaming w/ f32 accumulation -> compare to the f32 reference with a
    # loosened tolerance (review: exact match no longer expected).
    ATOL = RTOL = 3e-2

    # --- eval mode (dropout is identity, like model.eval()) -----------------
    out = forward(tokens)
    out = jax.block_until_ready(out)
    ref = reference_forward(tokens, params)
    assert out.shape == (B, VOCAB, T), out.shape
    assert jnp.allclose(out, ref, atol=ATOL, rtol=RTOL), \
        float(jnp.max(jnp.abs(out - ref)))

    # --- training mode: variational dropout (same mask across time) ---------
    p = 0.3
    emb_mask = jax.random.bernoulli(mkey1, 1.0 - p, (B, EMB)).astype(jnp.float32) / (1.0 - p)
    out_mask = jax.random.bernoulli(mkey2, 1.0 - p, (B, HID)).astype(jnp.float32) / (1.0 - p)
    out_tr = forward(tokens, emb_mask=emb_mask, out_mask=out_mask)
    out_tr = jax.block_until_ready(out_tr)
    ref_tr = reference_forward(tokens, params, emb_mask=emb_mask, out_mask=out_mask)
    assert jnp.allclose(out_tr, ref_tr, atol=ATOL, rtol=RTOL), \
        float(jnp.max(jnp.abs(out_tr - ref_tr)))

    print("KERNEL_OK")
</pallas_src>

<mosaic_0001>
module attributes {stable_mosaic.version = 11 : i64} {
  func.func @_copy(%arg0: i32, %arg1: memref<8x128xf32, #tpu.memory_space<vmem>>, %arg2: memref<8x128xf32, #tpu.memory_space<vmem>>) attributes {dimension_semantics = [#tpu.dimension_semantics<arbitrary>], iteration_bounds = array<i64: 2>, scalar_prefetch = 0 : i64, scratch_operands = 0 : i64, tpu.core_type = #tpu.core_type<tc>, window_params = [{pipeline_mode = #tpu.pipeline_mode<synchronous>, transform_indices = @transform_0, window_bounds = array<i64: 8, 128>}, {transform_indices = @transform_1, window_bounds = array<i64: 8, 128>}]} {
    %c0 = arith.constant 0 : index
    %c0_0 = arith.constant 0 : index
    %0 = vector.load %arg1[%c0, %c0_0] : memref<8x128xf32, #tpu.memory_space<vmem>>, vector<8x128xf32>
    %c0_1 = arith.constant 0 : index
    %c0_2 = arith.constant 0 : index
    %1 = vector.load %arg2[%c0_1, %c0_2] : memref<8x128xf32, #tpu.memory_space<vmem>>, vector<8x128xf32>
    tpu.vector_store %arg2[%c0_1, %c0_2], %0 {strides = array<i32>} : memref<8x128xf32, #tpu.memory_space<vmem>>, vector<8x128xf32>,
    return
  }
  func.func @transform_0(%arg0: i32) -> (i32, i32) {
    %c0_i32 = arith.constant 0 : i32
    %c0_i32_0 = arith.constant 0 : i32
    %c0_i32_1 = arith.constant 0 : i32
    return %c0_i32, %c0_i32_0 : i32, i32
  }
  func.func @transform_1(%arg0: i32) -> (i32, i32) {
    %c0_i32 = arith.constant 0 : i32
    %c0_i32_0 = arith.constant 0 : i32
    return %arg0, %c0_i32 : i32, i32
  }
}

module attributes {stable_mosaic.version = 11 : i64} {
  func.func @matmul_bias_kernel(%arg0: i32, %arg1: i32, %arg2: i32, %arg3: memref<64x128xbf16, #tpu.memory_space<vmem>>, %arg4: memref<128x128xbf16, #tpu.memory_space<vmem>>, %arg5: memref<1x128xf32, #tpu.memory_space<vmem>>, %arg6: memref<64x128xf32, #tpu.memory_space<vmem>>, %arg7: memref<64x128xf32, #tpu.memory_space<vmem>>) attributes {dimension_semantics = [#tpu.dimension_semantics<parallel>, #tpu.dimension_semantics<parallel>, #tpu.dimension_semantics<arbitrary>], iteration_bounds = array<i64: 1, 1, 1>, scalar_prefetch = 0 : i64, scratch_operands = 1 : i64, tpu.core_type = #tpu.core_type<tc>, window_params = [{transform_indices = @transform_0, window_bounds = array<i64: 64, 128>}, {transform_indices = @transform_1, window_bounds = array<i64: 128, 128>}, {transform_indices = @transform_2, window_bounds = array<i64: 1, 128>}, {transform_indices = @transform_3, window_bounds = array<i64: 64, 128>}]} {
    %c0_i32 = arith.constant 0 : i32
    %0 = arith.cmpi eq, %arg2, %c0_i32 : i32
    %1 = arith.extui %0 : i1 to i32
    %c0_i32_0 = arith.constant 0 : i32
    %2 = arith.cmpi ne, %1, %c0_i32_0 : i32
    scf.if %2 {
      %cst_10 = arith.constant 0.000000e+00 : f32
      %12 = vector.broadcast %cst_10 : f32 to vector<64x128xf32>
      %c0_11 = arith.constant 0 : index
      %c0_12 = arith.constant 0 : index
      %13 = vector.load %arg7[%c0_11, %c0_12] : memref<64x128xf32, #tpu.memory_space<vmem>>, vector<64x128xf32>
      tpu.vector_store %arg7[%c0_11, %c0_12], %12 {strides = array<i32>} : memref<64x128xf32, #tpu.memory_space<vmem>>, vector<64x128xf32>,
    } else {
    }
    %c0 = arith.constant 0 : index
    %c0_1 = arith.constant 0 : index
    %3 = vector.load %arg7[%c0, %c0_1] : memref<64x128xf32, #tpu.memory_space<vmem>>, vector<64x128xf32>
    %c0_2 = arith.constant 0 : index
    %c0_3 = arith.constant 0 : index
    %4 = vector.load %arg3[%c0_2, %c0_3] : memref<64x128xbf16, #tpu.memory_space<vmem>>, vector<64x128xbf16>
    %c0_4 = arith.constant 0 : index
    %c0_5 = arith.constant 0 : index
    %5 = vector.load %arg4[%c0_4, %c0_5] : memref<128x128xbf16, #tpu.memory_space<vmem>>, vector<128x128xbf16>
    %cst = arith.constant dense<0.000000e+00> : vector<64x128xf32>
    %6 = tpu.matmul %4, %5, %cst {dimension_numbers = #tpu.dot_dimension_numbers<[1], [0], [0], [1], [0, 0, 1, 1], [], []>} : vector<64x128xbf16>, vector<128x128xbf16>, vector<64x128xf32> -> vector<64x128xf32>
    %7 = arith.addf %3, %6 : vector<64x128xf32>
    %c0_6 = arith.constant 0 : index
    %c0_7 = arith.constant 0 : index
    %8 = vector.load %arg7[%c0_6, %c0_7] : memref<64x128xf32, #tpu.memory_space<vmem>>, vector<64x128xf32>
    tpu.vector_store %arg7[%c0_6, %c0_7], %7 {strides = array<i32>} : memref<64x128xf32, #tpu.memory_space<vmem>>, vector<64x128xf32>,
    %c0_i32_8 = arith.constant 0 : i32
    %9 = arith.cmpi eq, %arg2, %c0_i32_8 : i32
    %10 = arith.extui %9 : i1 to i32
    %c0_i32_9 = arith.constant 0 : i32
    %11 = arith.cmpi ne, %10, %c0_i32_9 : i32
    scf.if %11 {
      %c0_10 = arith.constant 0 : index
      %c0_11 = arith.constant 0 : index
      %12 = vector.load %arg7[%c0_10, %c0_11] : memref<64x128xf32, #tpu.memory_space<vmem>>, vector<64x128xf32>
      %c0_12 = arith.constant 0 : index
      %c0_13 = arith.constant 0 : index
      %13 = vector.load %arg5[%c0_12, %c0_13] : memref<1x128xf32, #tpu.memory_space<vmem>>, vector<1x128xf32>
      %14 = vector.broadcast %13 : vector<1x128xf32> to vector<64x128xf32>
      %15 = arith.addf %12, %14 : vector<64x128xf32>
      %c0_14 = arith.constant 0 : index
      %c0_15 = arith.constant 0 : index
      %16 = vector.load %arg6[%c0_14, %c0_15] : memref<64x128xf32, #tpu.memory_space<vmem>>, vector<64x128xf32>
      tpu.vector_store %arg6[%c0_14, %c0_15], %15 {strides = array<i32>} : memref<64x128xf32, #tpu.memory_space<vmem>>, vector<64x128xf32>,
    } else {
    }
    return
  }
  func.func @transform_0(%arg0: i32, %arg1: i32, %arg2: i32) -> (i32, i32) {
    %c0_i32 = arith.constant 0 : i32
    return %arg0, %arg2 : i32, i32
  }
  func.func @transform_1(%arg0: i32, %arg1: i32, %arg2: i32) -> (i32, i32) {
    %c0_i32 = arith.constant 0 : i32
    return %arg2, %arg1 : i32, i32
  }
  func.func @transform_2(%arg0: i32, %arg1: i32, %arg2: i32) -> (i32, i32) {
    %c0_i32 = arith.constant 0 : i32
    %c0_i32_0 = arith.constant 0 : i32
    return %c0_i32, %arg1 : i32, i32
  }
  func.func @transform_3(%arg0: i32, %arg1: i32, %arg2: i32) -> (i32, i32) {
    %c0_i32 = arith.constant 0 : i32
    return %arg0, %arg1 : i32, i32
  }
}

module attributes {stable_mosaic.version = 11 : i64} {
  func.func @lstm_fused_kernel(%arg0: i32, %arg1: i32, %arg2: memref<8x8x128xbf16, #tpu.memory_space<vmem>>, %arg3: memref<128x512xbf16, #tpu.memory_space<vmem>>, %arg4: memref<128x512xbf16, #tpu.memory_space<vmem>>, %arg5: memref<1x512xf32, #tpu.memory_space<vmem>>, %arg6: memref<8x128xf32, #tpu.memory_space<vmem>>, %arg7: memref<8x8x128xbf16, #tpu.memory_space<vmem>>, %arg8: memref<8x128xf32, #tpu.memory_space<vmem>>, %arg9: memref<8x128xf32, #tpu.memory_space<vmem>>, %arg10: memref<8x8x512xf32, #tpu.memory_space<vmem>>) attributes {dimension_semantics = [#tpu.dimension_semantics<parallel>, #tpu.dimension_semantics<arbitrary>], iteration_bounds = array<i64: 1, 1>, scalar_prefetch = 0 : i64, scratch_operands = 3 : i64, tpu.core_type = #tpu.core_type<tc>, window_params = [{transform_indices = @transform_0, window_bounds = array<i64: 8, 8, 128>}, {pipeline_mode = #tpu.pipeline_mode<synchronous>, transform_indices = @transform_1, window_bounds = array<i64: 128, 512>}, {pipeline_mode = #tpu.pipeline_mode<synchronous>, transform_indices = @transform_2, window_bounds = array<i64: 128, 512>}, {pipeline_mode = #tpu.pipeline_mode<synchronous>, transform_indices = @transform_3, window_bounds = array<i64: 1, 512>}, {transform_indices = @transform_4, window_bounds = array<i64: 8, 128>}, {transform_indices = @transform_5, window_bounds = array<i64: 8, 8, 128>}]} {
    %c0_i32 = arith.constant 0 : i32
    %0 = arith.cmpi eq, %arg1, %c0_i32 : i32
    %1 = arith.extui %0 : i1 to i32
    %c0_i32_0 = arith.constant 0 : i32
    %2 = arith.cmpi ne, %1, %c0_i32_0 : i32
    scf.if %2 {
      %cst_135 = arith.constant 0.000000e+00 : f32
      %363 = vector.broadcast %cst_135 : f32 to vector<8x128xf32>
      %c0_136 = arith.constant 0 : index
      %c0_137 = arith.constant 0 : index
      %364 = vector.load %arg8[%c0_136, %c0_137] : memref<8x128xf32, #tpu.memory_space<vmem>>, vector<8x128xf32>
      tpu.vector_store %arg8[%c0_136, %c0_137], %363 {strides = array<i32>} : memref<8x128xf32, #tpu.memory_space<vmem>>, vector<8x128xf32>,
      %cst_138 = arith.constant 0.000000e+00 : f32
      %365 = vector.broadcast %cst_138 : f32 to vector<8x128xf32>
      %c0_139 = arith.constant 0 : index
      %c0_140 = arith.constant 0 : index
      %366 = vector.load %arg9[%c0_139, %c0_140] : memref<8x128xf32, #tpu.memory_space<vmem>>, vector<8x128xf32>
      tpu.vector_store %arg9[%c0_139, %c0_140], %365 {strides = array<i32>} : memref<8x128xf32, #tpu.memory_space<vmem>>, vector<8x128xf32>,
    } else {
    }
    %c0 = arith.constant 0 : index
    %c0_1 = arith.constant 0 : index
    %c0_2 = arith.constant 0 : index
    %3 = vector.load %arg2[%c0, %c0_1, %c0_2] : memref<8x8x128xbf16, #tpu.memory_space<vmem>>, vector<8x8x128xbf16>
    %4 = vector.shape_cast %3 : vector<8x8x128xbf16> to vector<64x128xbf16>
    %c0_3 = arith.constant 0 : index
    %c0_4 = arith.constant 0 : index
    %5 = vector.load %arg3[%c0_3, %c0_4] : memref<128x512xbf16, #tpu.memory_space<vmem>>, vector<128x512xbf16>
    %cst = arith.constant dense<0.000000e+00> : vector<64x512xf32>
    %6 = tpu.matmul %4, %5, %cst {dimension_numbers = #tpu.dot_dimension_numbers<[1], [0], [0], [1], [0, 0, 1, 1], [], []>} : vector<64x128xbf16>, vector<128x512xbf16>, vector<64x512xf32> -> vector<64x512xf32>
    %7 = vector.shape_cast %6 : vector<64x512xf32> to vector<8x8x512xf32>
    %c0_5 = arith.constant 0 : index
    %c0_6 = arith.constant 0 : index
    %8 = vector.load %arg5[%c0_5, %c0_6] : memref<1x512xf32, #tpu.memory_space<vmem>>, vector<1x512xf32>
    %9 = vector.shape_cast %8 : vector<1x512xf32> to vector<1x1x512xf32>
    %10 = vector.broadcast %9 : vector<1x1x512xf32> to vector<8x8x512xf32>
    %11 = arith.addf %7, %10 : vector<8x8x512xf32>
    %c0_7 = arith.constant 0 : index
    %c0_8 = arith.constant 0 : index
    %c0_9 = arith.constant 0 : index
    %12 = vector.load %arg10[%c0_7, %c0_8, %c0_9] : memref<8x8x512xf32, #tpu.memory_space<vmem>>, vector<8x8x512xf32>
    tpu.vector_store %arg10[%c0_7, %c0_8, %c0_9], %11 {strides = array<i32>} : memref<8x8x512xf32, #tpu.memory_space<vmem>>, vector<8x8x512xf32>,
    %c0_10 = arith.constant 0 : index
    %c0_11 = arith.constant 0 : index
    %13 = vector.load %arg4[%c0_10, %c0_11] : memref<128x512xbf16, #tpu.memory_space<vmem>>, vector<128x512xbf16>
    %c0_12 = arith.constant 0 : index
    %c0_13 = arith.constant 0 : index
    %14 = vector.load %arg6[%c0_12, %c0_13] : memref<8x128xf32, #tpu.memory_space<vmem>>, vector<8x128xf32>
    %c0_14 = arith.constant 0 : index
    %c0_15 = arith.constant 0 : index
    %15 = vector.load %arg8[%c0_14, %c0_15] : memref<8x128xf32, #tpu.memory_space<vmem>>, vector<8x128xf32>
    %c0_16 = arith.constant 0 : index
    %c0_17 = arith.constant 0 : index
    %16 = vector.load %arg9[%c0_16, %c0_17] : memref<8x128xf32, #tpu.memory_space<vmem>>, vector<8x128xf32>
    %c0_i32_18 = arith.constant 0 : i32
    %17 = arith.index_cast %c0_i32_18 : i32 to index
    %c0_19 = arith.constant 0 : index
    %c0_20 = arith.constant 0 : index
    %18 = vector.load %arg10[%17, %c0_19, %c0_20] : memref<8x8x512xf32, #tpu.memory_space<vmem>>, vector<1x8x512xf32>
    %19 = vector.shape_cast %18 : vector<1x8x512xf32> to vector<8x512xf32>
    %20 = arith.truncf %15 : vector<8x128xf32> to vector<8x128xbf16>
    %cst_21 = arith.constant dense<0.000000e+00> : vector<8x512xf32>
    %21 = tpu.matmul %20, %13, %cst_21 {dimension_numbers = #tpu.dot_dimension_numbers<[1], [0], [0], [1], [0, 0, 1, 1], [], []>} : vector<8x128xbf16>, vector<128x512xbf16>, vector<8x512xf32> -> vector<8x512xf32>
    %22 = arith.addf %19, %21 : vector<8x512xf32>
    %23 = vector.extract_strided_slice %22 {offsets = [0, 0], sizes = [8, 128], strides = [1, 1]} : vector<8x512xf32> to vector<8x128xf32>
    %cst_22 = arith.constant 5.000000e-01 : f32
    %24 = vector.broadcast %cst_22 : f32 to vector<8x128xf32>
    %25 = arith.mulf %24, %23 : vector<8x128xf32>
    %26 = math.tanh %25 : vector<8x128xf32>
    %cst_23 = arith.constant 1.000000e+00 : f32
    %27 = vector.broadcast %cst_23 : f32 to vector<8x128xf32>
    %28 = arith.addf %26, %27 : vector<8x128xf32>
    %cst_24 = arith.constant 5.000000e-01 : f32
    %29 = vector.broadcast %cst_24 : f32 to vector<8x128xf32>
    %30 = arith.mulf %29, %28 : vector<8x128xf32>
    %31 = vector.extract_strided_slice %22 {offsets = [0, 128], sizes = [8, 128], strides = [1, 1]} : vector<8x512xf32> to vector<8x128xf32>
    %cst_25 = arith.constant 5.000000e-01 : f32
    %32 = vector.broadcast %cst_25 : f32 to vector<8x128xf32>
    %33 = arith.mulf %32, %31 : vector<8x128xf32>
    %34 = math.tanh %33 : vector<8x128xf32>
    %cst_26 = arith.constant 1.000000e+00 : f32
    %35 = vector.broadcast %cst_26 : f32 to vector<8x128xf32>
    %36 = arith.addf %34, %35 : vector<8x128xf32>
    %cst_27 = arith.constant 5.000000e-01 : f32
    %37 = vector.broadcast %cst_27 : f32 to vector<8x128xf32>
    %38 = arith.mulf %37, %36 : vector<8x128xf32>
    %39 = vector.extract_strided_slice %22 {offsets = [0, 256], sizes = [8, 128], strides = [1, 1]} : vector<8x512xf32> to vector<8x128xf32>
    %40 = math.tanh %39 : vector<8x128xf32>
    %41 = vector.extract_strided_slice %22 {offsets = [0, 384], sizes = [8, 128], strides = [1, 1]} : vector<8x512xf32> to vector<8x128xf32>
    %cst_28 = arith.constant 5.000000e-01 : f32
    %42 = vector.broadcast %cst_28 : f32 to vector<8x128xf32>
    %43 = arith.mulf %42, %41 : vector<8x128xf32>
    %44 = math.tanh %43 : vector<8x128xf32>
    %cst_29 = arith.constant 1.000000e+00 : f32
    %45 = vector.broadcast %cst_29 : f32 to vector<8x128xf32>
    %46 = arith.addf %44, %45 : vector<8x128xf32>
    %cst_30 = arith.constant 5.000000e-01 : f32
    %47 = vector.broadcast %cst_30 : f32 to vector<8x128xf32>
    %48 = arith.mulf %47, %46 : vector<8x128xf32>
    %49 = arith.mulf %38, %16 : vector<8x128xf32>
    %50 = arith.mulf %30, %40 : vector<8x128xf32>
    %51 = arith.addf %49, %50 : vector<8x128xf32>
    %52 = math.tanh %51 : vector<8x128xf32>
    %53 = arith.mulf %48, %52 : vector<8x128xf32>
    %54 = arith.mulf %53, %14 : vector<8x128xf32>
    %55 = arith.truncf %54 : vector<8x128xf32> to vector<8x128xbf16>
    %56 = arith.index_cast %c0_i32_18 : i32 to index
    %c0_31 = arith.constant 0 : index
    %c0_32 = arith.constant 0 : index
    %57 = vector.load %arg7[%56, %c0_31, %c0_32] : memref<8x8x128xbf16, #tpu.memory_space<vmem>>, vector<1x8x128xbf16>
    %58 = vector.shape_cast %57 : vector<1x8x128xbf16> to vector<8x128xbf16>
    %59 = vector.shape_cast %55 : vector<8x128xbf16> to vector<1x8x128xbf16>
    tpu.vector_store %arg7[%56, %c0_31, %c0_32], %59 {strides = array<i32>} : memref<8x8x128xbf16, #tpu.memory_space<vmem>>, vector<1x8x128xbf16>,
    %c1_i32 = arith.constant 1 : i32
    %60 = arith.index_cast %c1_i32 : i32 to index
    %c0_33 = arith.constant 0 : index
    %c0_34 = arith.constant 0 : index
    %61 = vector.load %arg10[%60, %c0_33, %c0_34] : memref<8x8x512xf32, #tpu.memory_space<vmem>>, vector<1x8x512xf32>
    %62 = vector.shape_cast %61 : vector<1x8x512xf32> to vector<8x512xf32>
    %63 = arith.truncf %53 : vector<8x128xf32> to vector<8x128xbf16>
    %cst_35 = arith.constant dense<0.000000e+00> : vector<8x512xf32>
    %64 = tpu.matmul %63, %13, %cst_35 {dimension_numbers = #tpu.dot_dimension_numbers<[1], [0], [0], [1], [0, 0, 1, 1], [], []>} : vector<8x128xbf16>, vector<128x512xbf16>, vector<8x512xf32> -> vector<8x512xf32>
    %65 = arith.addf %62, %64 : vector<8x512xf32>
    %66 = vector.extract_strided_slice %65 {offsets = [0, 0], sizes = [8, 128], strides = [1, 1]} : vector<8x512xf32> to vector<8x128xf32>
    %cst_36 = arith.constant 5.000000e-01 : f32
    %67 = vector.broadcast %cst_36 : f32 to vector<8x128xf32>
    %68 = arith.mulf %67, %66 : vector<8x128xf32>
    %69 = math.tanh %68 : vector<8x128xf32>
    %cst_37 = arith.constant 1.000000e+00 : f32
    %70 = vector.broadcast %cst_37 : f32 to vector<8x128xf32>
    %71 = arith.addf %69, %70 : vector<8x128xf32>
    %cst_38 = arith.constant 5.000000e-01 : f32
    %72 = vector.broadcast %cst_38 : f32 to vector<8x128xf32>
    %73 = arith.mulf %72, %71 : vector<8x128xf32>
    %74 = vector.extract_strided_slice %65 {offsets = [0, 128], sizes = [8, 128], strides = [1, 1]} : vector<8x512xf32> to vector<8x128xf32>
    %cst_39 = arith.constant 5.000000e-01 : f32
    %75 = vector.broadcast %cst_39 : f32 to vector<8x128xf32>
    %76 = arith.mulf %75, %74 : vector<8x128xf32>
    %77 = math.tanh %76 : vector<8x128xf32>
    %cst_40 = arith.constant 1.000000e+00 : f32
    %78 = vector.broadcast %cst_40 : f32 to vector<8x128xf32>
    %79 = arith.addf %77, %78 : vector<8x128xf32>
    %cst_41 = arith.constant 5.000000e-01 : f32
    %80 = vector.broadcast %cst_41 : f32 to vector<8x128xf32>
    %81 = arith.mulf %80, %79 : vector<8x128xf32>
    %82 = vector.extract_strided_slice %65 {offsets = [0, 256], sizes = [8, 128], strides = [1, 1]} : vector<8x512xf32> to vector<8x128xf32>
    %83 = math.tanh %82 : vector<8x128xf32>
    %84 = vector.extract_strided_slice %65 {offsets = [0, 384], sizes = [8, 128], strides = [1, 1]} : vector<8x512xf32> to vector<8x128xf32>
    %cst_42 = arith.constant 5.000000e-01 : f32
    %85 = vector.broadcast %cst_42 : f32 to vector<8x128xf32>
    %86 = arith.mulf %85, %84 : vector<8x128xf32>
    %87 = math.tanh %86 : vector<8x128xf32>
    %cst_43 = arith.constant 1.000000e+00 : f32
    %88 = vector.broadcast %cst_43 : f32 to vector<8x128xf32>
    %89 = arith.addf %87, %88 : vector<8x128xf32>
    %cst_44 = arith.constant 5.000000e-01 : f32
    %90 = vector.broadcast %cst_44 : f32 to vector<8x128xf32>
    %91 = arith.mulf %90, %89 : vector<8x128xf32>
    %92 = arith.mulf %81, %51 : vector<8x128xf32>
    %93 = arith.mulf %73, %83 : vector<8x128xf32>
    %94 = arith.addf %92, %93 : vector<8x128xf32>
    %95 = math.tanh %94 : vector<8x128xf32>
    %96 = arith.mulf %91, %95 : vector<8x128xf32>
    %97 = arith.mulf %96, %14 : vector<8x128xf32>
    %98 = arith.truncf %97 : vector<8x128xf32> to vector<8x128xbf16>
    %99 = arith.index_cast %c1_i32 : i32 to index
    %c0_45 = arith.constant 0 : index
    %c0_46 = arith.constant 0 : index
    %100 = vector.load %arg7[%99, %c0_45, %c0_46] : memref<8x8x128xbf16, #tpu.memory_space<vmem>>, vector<1x8x128xbf16>
    %101 = vector.shape_cast %100 : vector<1x8x128xbf16> to vector<8x128xbf16>
    %102 = vector.shape_cast %98 : vector<8x128xbf16> to vector<1x8x128xbf16>
    tpu.vector_store %arg7[%99, %c0_45, %c0_46], %102 {strides = array<i32>} : memref<8x8x128xbf16, #tpu.memory_space<vmem>>, vector<1x8x128xbf16>,
    %c2_i32 = arith.constant 2 : i32
    %103 = arith.index_cast %c2_i32 : i32 to index
    %c0_47 = arith.constant 0 : index
    %c0_48 = arith.constant 0 : index
    %104 = vector.load %arg10[%103, %c0_47, %c0_48] : memref<8x8x512xf32, #tpu.memory_space<vmem>>, vector<1x8x512xf32>
    %105 = vector.shape_cast %104 : vector<1x8x512xf32> to vector<8x512xf32>
    %106 = arith.truncf %96 : vector<8x128xf32> to vector<8x128xbf16>
    %cst_49 = arith.constant dense<0.000000e+00> : vector<8x512xf32>
    %107 = tpu.matmul %106, %13, %cst_49 {dimension_numbers = #tpu.dot_dimension_numbers<[1], [0], [0], [1], [0, 0, 1, 1], [], []>} : vector<8x128xbf16>, vector<128x512xbf16>, vector<8x512xf32> -> vector<8x512xf32>
    %108 = arith.addf %105, %107 : vector<8x512xf32>
    %109 = vector.extract_strided_slice %108 {offsets = [0, 0], sizes = [8, 128], strides = [1, 1]} : vector<8x512xf32> to vector<8x128xf32>
    %cst_50 = arith.constant 5.000000e-01 : f32
    %110 = vector.broadcast %cst_50 : f32 to vector<8x128xf32>
    %111 = arith.mulf %110, %109 : vector<8x128xf32>
    %112 = math.tanh %111 : vector<8x128xf32>
    %cst_51 = arith.constant 1.000000e+00 : f32
    %113 = vector.broadcast %cst_51 : f32 to vector<8x128xf32>
    %114 = arith.addf %112, %113 : vector<8x128xf32>
    %cst_52 = arith.constant 5.000000e-01 : f32
    %115 = vector.broadcast %cst_52 : f32 to vector<8x128xf32>
    %116 = arith.mulf %115, %114 : vector<8x128xf32>
    %117 = vector.extract_strided_slice %108 {offsets = [0, 128], sizes = [8, 128], strides = [1, 1]} : vector<8x512xf32> to vector<8x128xf32>
    %cst_53 = arith.constant 5.000000e-01 : f32
    %118 = vector.broadcast %cst_53 : f32 to vector<8x128xf32>
    %119 = arith.mulf %118, %117 : vector<8x128xf32>
    %120 = math.tanh %119 : vector<8x128xf32>
    %cst_54 = arith.constant 1.000000e+00 : f32
    %121 = vector.broadcast %cst_54 : f32 to vector<8x128xf32>
    %122 = arith.addf %120, %121 : vector<8x128xf32>
    %cst_55 = arith.constant 5.000000e-01 : f32
    %123 = vector.broadcast %cst_55 : f32 to vector<8x128xf32>
    %124 = arith.mulf %123, %122 : vector<8x128xf32>
    %125 = vector.extract_strided_slice %108 {offsets = [0, 256], sizes = [8, 128], strides = [1, 1]} : vector<8x512xf32> to vector<8x128xf32>
    %126 = math.tanh %125 : vector<8x128xf32>
    %127 = vector.extract_strided_slice %108 {offsets = [0, 384], sizes = [8, 128], strides = [1, 1]} : vector<8x512xf32> to vector<8x128xf32>
    %cst_56 = arith.constant 5.000000e-01 : f32
    %128 = vector.broadcast %cst_56 : f32 to vector<8x128xf32>
    %129 = arith.mulf %128, %127 : vector<8x128xf32>
    %130 = math.tanh %129 : vector<8x128xf32>
    %cst_57 = arith.constant 1.000000e+00 : f32
    %131 = vector.broadcast %cst_57 : f32 to vector<8x128xf32>
    %132 = arith.addf %130, %131 : vector<8x128xf32>
    %cst_58 = arith.constant 5.000000e-01 : f32
    %133 = vector.broadcast %cst_58 : f32 to vector<8x128xf32>
    %134 = arith.mulf %133, %132 : vector<8x128xf32>
    %135 = arith.mulf %124, %94 : vector<8x128xf32>
    %136 = arith.mulf %116, %126 : vector<8x128xf32>
    %137 = arith.addf %135, %136 : vector<8x128xf32>
    %138 = math.tanh %137 : vector<8x128xf32>
    %139 = arith.mulf %134, %138 : vector<8x128xf32>
    %140 = arith.mulf %139, %14 : vector<8x128xf32>
    %141 = arith.truncf %140 : vector<8x128xf32> to vector<8x128xbf16>
    %142 = arith.index_cast %c2_i32 : i32 to index
    %c0_59 = arith.constant 0 : index
    %c0_60 = arith.constant 0 : index
    %143 = vector.load %arg7[%142, %c0_59, %c0_60] : memref<8x8x128xbf16, #tpu.memory_space<vmem>>, vector<1x8x128xbf16>
    %144 = vector.shape_cast %143 : vector<1x8x128xbf16> to vector<8x128xbf16>
    %145 = vector.shape_cast %141 : vector<8x128xbf16> to vector<1x8x128xbf16>
    tpu.vector_store %arg7[%142, %c0_59, %c0_60], %145 {strides = array<i32>} : memref<8x8x128xbf16, #tpu.memory_space<vmem>>, vector<1x8x128xbf16>,
    %c3_i32 = arith.constant 3 : i32
    %146 = arith.index_cast %c3_i32 : i32 to index
    %c0_61 = arith.constant 0 : index
    %c0_62 = arith.constant 0 : index
    %147 = vector.load %arg10[%146, %c0_61, %c0_62] : memref<8x8x512xf32, #tpu.memory_space<vmem>>, vector<1x8x512xf32>
    %148 = vector.shape_cast %147 : vector<1x8x512xf32> to vector<8x512xf32>
    %149 = arith.truncf %139 : vector<8x128xf32> to vector<8x128xbf16>
    %cst_63 = arith.constant dense<0.000000e+00> : vector<8x512xf32>
    %150 = tpu.matmul %149, %13, %cst_63 {dimension_numbers = #tpu.dot_dimension_numbers<[1], [0], [0], [1], [0, 0, 1, 1], [], []>} : vector<8x128xbf16>, vector<128x512xbf16>, vector<8x512xf32> -> vector<8x512xf32>
    %151 = arith.addf %148, %150 : vector<8x512xf32>
    %152 = vector.extract_strided_slice %151 {offsets = [0, 0], sizes = [8, 128], strides = [1, 1]} : vector<8x512xf32> to vector<8x128xf32>
    %cst_64 = arith.constant 5.000000e-01 : f32
    %153 = vector.broadcast %cst_64 : f32 to vector<8x128xf32>
    %154 = arith.mulf %153, %152 : vector<8x128xf32>
    %155 = math.tanh %154 : vector<8x128xf32>
    %cst_65 = arith.constant 1.000000e+00 : f32
    %156 = vector.broadcast %cst_65 : f32 to vector<8x128xf32>
    %157 = arith.addf %155, %156 : vector<8x128xf32>
    %cst_66 = arith.constant 5.000000e-01 : f32
    %158 = vector.broadcast %cst_66 : f32 to vector<8x128xf32>
    %159 = arith.mulf %158, %157 : vector<8x128xf32>
    %160 = vector.extract_strided_slice %151 {offsets = [0, 128], sizes = [8, 128], strides = [1, 1]} : vector<8x512xf32> to vector<8x128xf32>
    %cst_67 = arith.constant 5.000000e-01 : f32
    %161 = vector.broadcast %cst_67 : f32 to vector<8x128xf32>
    %162 = arith.mulf %161, %160 : vector<8x128xf32>
    %163 = math.tanh %162 : vector<8x128xf32>
    %cst_68 = arith.constant 1.000000e+00 : f32
    %164 = vector.broadcast %cst_68 : f32 to vector<8x128xf32>
    %165 = arith.addf %163, %164 : vector<8x128xf32>
    %cst_69 = arith.constant 5.000000e-01 : f32
    %166 = vector.broadcast %cst_69 : f32 to vector<8x128xf32>
    %167 = arith.mulf %166, %165 : vector<8x128xf32>
    %168 = vector.extract_strided_slice %151 {offsets = [0, 256], sizes = [8, 128], strides = [1, 1]} : vector<8x512xf32> to vector<8x128xf32>
    %169 = math.tanh %168 : vector<8x128xf32>
    %170 = vector.extract_strided_slice %151 {offsets = [0, 384], sizes = [8, 128], strides = [1, 1]} : vector<8x512xf32> to vector<8x128xf32>
    %cst_70 = arith.constant 5.000000e-01 : f32
    %171 = vector.broadcast %cst_70 : f32 to vector<8x128xf32>
    %172 = arith.mulf %171, %170 : vector<8x128xf32>
    %173 = math.tanh %172 : vector<8x128xf32>
    %cst_71 = arith.constant 1.000000e+00 : f32
    %174 = vector.broadcast %cst_71 : f32 to vector<8x128xf32>
    %175 = arith.addf %173, %174 : vector<8x128xf32>
    %cst_72 = arith.constant 5.000000e-01 : f32
    %176 = vector.broadcast %cst_72 : f32 to vector<8x128xf32>
    %177 = arith.mulf %176, %175 : vector<8x128xf32>
    %178 = arith.mulf %167, %137 : vector<8x128xf32>
    %179 = arith.mulf %159, %169 : vector<8x128xf32>
    %180 = arith.addf %178, %179 : vector<8x128xf32>
    %181 = math.tanh %180 : vector<8x128xf32>
    %182 = arith.mulf %177, %181 : vector<8x128xf32>
    %183 = arith.mulf %182, %14 : vector<8x128xf32>
    %184 = arith.truncf %183 : vector<8x128xf32> to vector<8x128xbf16>
    %185 = arith.index_cast %c3_i32 : i32 to index
    %c0_73 = arith.constant 0 : index
    %c0_74 = arith.constant 0 : index
    %186 = vector.load %arg7[%185, %c0_73, %c0_74] : memref<8x8x128xbf16, #tpu.memory_space<vmem>>, vector<1x8x128xbf16>
    %187 = vector.shape_cast %186 : vector<1x8x128xbf16> to vector<8x128xbf16>
    %188 = vector.shape_cast %184 : vector<8x128xbf16> to vector<1x8x128xbf16>
    tpu.vector_store %arg7[%185, %c0_73, %c0_74], %188 {strides = array<i32>} : memref<8x8x128xbf16, #tpu.memory_space<vmem>>, vector<1x8x128xbf16>,
    %c4_i32 = arith.constant 4 : i32
    %189 = arith.index_cast %c4_i32 : i32 to index
    %c0_75 = arith.constant 0 : index
    %c0_76 = arith.constant 0 : index
    %190 = vector.load %arg10[%189, %c0_75, %c0_76] : memref<8x8x512xf32, #tpu.memory_space<vmem>>, vector<1x8x512xf32>
    %191 = vector.shape_cast %190 : vector<1x8x512xf32> to vector<8x512xf32>
    %192 = arith.truncf %182 : vector<8x128xf32> to vector<8x128xbf16>
    %cst_77 = arith.constant dense<0.000000e+00> : vector<8x512xf32>
    %193 = tpu.matmul %192, %13, %cst_77 {dimension_numbers = #tpu.dot_dimension_numbers<[1], [0], [0], [1], [0, 0, 1, 1], [], []>} : vector<8x128xbf16>, vector<128x512xbf16>, vector<8x512xf32> -> vector<8x512xf32>
    %194 = arith.addf %191, %193 : vector<8x512xf32>
    %195 = vector.extract_strided_slice %194 {offsets = [0, 0], sizes = [8, 128], strides = [1, 1]} : vector<8x512xf32> to vector<8x128xf32>
    %cst_78 = arith.constant 5.000000e-01 : f32
    %196 = vector.broadcast %cst_78 : f32 to vector<8x128xf32>
    %197 = arith.mulf %196, %195 : vector<8x128xf32>
    %198 = math.tanh %197 : vector<8x128xf32>
    %cst_79 = arith.constant 1.000000e+00 : f32
    %199 = vector.broadcast %cst_79 : f32 to vector<8x128xf32>
    %200 = arith.addf %198, %199 : vector<8x128xf32>
    %cst_80 = arith.constant 5.000000e-01 : f32
    %201 = vector.broadcast %cst_80 : f32 to vector<8x128xf32>
    %202 = arith.mulf %201, %200 : vector<8x128xf32>
    %203 = vector.extract_strided_slice %194 {offsets = [0, 128], sizes = [8, 128], strides = [1, 1]} : vector<8x512xf32> to vector<8x128xf32>
    %cst_81 = arith.constant 5.000000e-01 : f32
    %204 = vector.broadcast %cst_81 : f32 to vector<8x128xf32>
    %205 = arith.mulf %204, %203 : vector<8x128xf32>
    %206 = math.tanh %205 : vector<8x128xf32>
    %cst_82 = arith.constant 1.000000e+00 : f32
    %207 = vector.broadcast %cst_82 : f32 to vector<8x128xf32>
    %208 = arith.addf %206, %207 : vector<8x128xf32>
    %cst_83 = arith.constant 5.000000e-01 : f32
    %209 = vector.broadcast %cst_83 : f32 to vector<8x128xf32>
    %210 = arith.mulf %209, %208 : vector<8x128xf32>
    %211 = vector.extract_strided_slice %194 {offsets = [0, 256], sizes = [8, 128], strides = [1, 1]} : vector<8x512xf32> to vector<8x128xf32>
    %212 = math.tanh %211 : vector<8x128xf32>
    %213 = vector.extract_strided_slice %194 {offsets = [0, 384], sizes = [8, 128], strides = [1, 1]} : vector<8x512xf32> to vector<8x128xf32>
    %cst_84 = arith.constant 5.000000e-01 : f32
    %214 = vector.broadcast %cst_84 : f32 to vector<8x128xf32>
    %215 = arith.mulf %214, %213 : vector<8x128xf32>
    %216 = math.tanh %215 : vector<8x128xf32>
    %cst_85 = arith.constant 1.000000e+00 : f32
    %217 = vector.broadcast %cst_85 : f32 to vector<8x128xf32>
    %218 = arith.addf %216, %217 : vector<8x128xf32>
    %cst_86 = arith.constant 5.000000e-01 : f32
    %219 = vector.broadcast %cst_86 : f32 to vector<8x128xf32>
    %220 = arith.mulf %219, %218 : vector<8x128xf32>
    %221 = arith.mulf %210, %180 : vector<8x128xf32>
    %222 = arith.mulf %202, %212 : vector<8x128xf32>
    %223 = arith.addf %221, %222 : vector<8x128xf32>
    %224 = math.tanh %223 : vector<8x128xf32>
    %225 = arith.mulf %220, %224 : vector<8x128xf32>
    %226 = arith.mulf %225, %14 : vector<8x128xf32>
    %227 = arith.truncf %226 : vector<8x128xf32> to vector<8x128xbf16>
    %228 = arith.index_cast %c4_i32 : i32 to index
    %c0_87 = arith.constant 0 : index
    %c0_88 = arith.constant 0 : index
    %229 = vector.load %arg7[%228, %c0_87, %c0_88] : memref<8x8x128xbf16, #tpu.memory_space<vmem>>, vector<1x8x128xbf16>
    %230 = vector.shape_cast %229 : vector<1x8x128xbf16> to vector<8x128xbf16>
    %231 = vector.shape_cast %227 : vector<8x128xbf16> to vector<1x8x128xbf16>
    tpu.vector_store %arg7[%228, %c0_87, %c0_88], %231 {strides = array<i32>} : memref<8x8x128xbf16, #tpu.memory_space<vmem>>, vector<1x8x128xbf16>,
    %c5_i32 = arith.constant 5 : i32
    %232 = arith.index_cast %c5_i32 : i32 to index
    %c0_89 = arith.constant 0 : index
    %c0_90 = arith.constant 0 : index
    %233 = vector.load %arg10[%232, %c0_89, %c0_90] : memref<8x8x512xf32, #tpu.memory_space<vmem>>, vector<1x8x512xf32>
    %234 = vector.shape_cast %233 : vector<1x8x512xf32> to vector<8x512xf32>
    %235 = arith.truncf %225 : vector<8x128xf32> to vector<8x128xbf16>
    %cst_91 = arith.constant dense<0.000000e+00> : vector<8x512xf32>
    %236 = tpu.matmul %235, %13, %cst_91 {dimension_numbers = #tpu.dot_dimension_numbers<[1], [0], [0], [1], [0, 0, 1, 1], [], []>} : vector<8x128xbf16>, vector<128x512xbf16>, vector<8x512xf32> -> vector<8x512xf32>
    %237 = arith.addf %234, %236 : vector<8x512xf32>
    %238 = vector.extract_strided_slice %237 {offsets = [0, 0], sizes = [8, 128], strides = [1, 1]} : vector<8x512xf32> to vector<8x128xf32>
    %cst_92 = arith.constant 5.000000e-01 : f32
    %239 = vector.broadcast %cst_92 : f32 to vector<8x128xf32>
    %240 = arith.mulf %239, %238 : vector<8x128xf32>
    %241 = math.tanh %240 : vector<8x128xf32>
    %cst_93 = arith.constant 1.000000e+00 : f32
    %242 = vector.broadcast %cst_93 : f32 to vector<8x128xf32>
    %243 = arith.addf %241, %242 : vector<8x128xf32>
    %cst_94 = arith.constant 5.000000e-01 : f32
    %244 = vector.broadcast %cst_94 : f32 to vector<8x128xf32>
    %245 = arith.mulf %244, %243 : vector<8x128xf32>
    %246 = vector.extract_strided_slice %237 {offsets = [0, 128], sizes = [8, 128], strides = [1, 1]} : vector<8x512xf32> to vector<8x128xf32>
    %cst_95 = arith.constant 5.000000e-01 : f32
    %247 = vector.broadcast %cst_95 : f32 to vector<8x128xf32>
    %248 = arith.mulf %247, %246 : vector<8x128xf32>
    %249 = math.tanh %248 : vector<8x128xf32>
    %cst_96 = arith.constant 1.000000e+00 : f32
    %250 = vector.broadcast %cst_96 : f32 to vector<8x128xf32>
    %251 = arith.addf %249, %250 : vector<8x128xf32>
    %cst_97 = arith.constant 5.000000e-01 : f32
    %252 = vector.broadcast %cst_97 : f32 to vector<8x128xf32>
    %253 = arith.mulf %252, %251 : vector<8x128xf32>
    %254 = vector.extract_strided_slice %237 {offsets = [0, 256], sizes = [8, 128], strides = [1, 1]} : vector<8x512xf32> to vector<8x128xf32>
    %255 = math.tanh %254 : vector<8x128xf32>
    %256 = vector.extract_strided_slice %237 {offsets = [0, 384], sizes = [8, 128], strides = [1, 1]} : vector<8x512xf32> to vector<8x128xf32>
    %cst_98 = arith.constant 5.000000e-01 : f32
    %257 = vector.broadcast %cst_98 : f32 to vector<8x128xf32>
    %258 = arith.mulf %257, %256 : vector<8x128xf32>
    %259 = math.tanh %258 : vector<8x128xf32>
    %cst_99 = arith.constant 1.000000e+00 : f32
    %260 = vector.broadcast %cst_99 : f32 to vector<8x128xf32>
    %261 = arith.addf %259, %260 : vector<8x128xf32>
    %cst_100 = arith.constant 5.000000e-01 : f32
    %262 = vector.broadcast %cst_100 : f32 to vector<8x128xf32>
    %263 = arith.mulf %262, %261 : vector<8x128xf32>
    %264 = arith.mulf %253, %223 : vector<8x128xf32>
    %265 = arith.mulf %245, %255 : vector<8x128xf32>
    %266 = arith.addf %264, %265 : vector<8x128xf32>
    %267 = math.tanh %266 : vector<8x128xf32>
    %268 = arith.mulf %263, %267 : vector<8x128xf32>
    %269 = arith.mulf %268, %14 : vector<8x128xf32>
    %270 = arith.truncf %269 : vector<8x128xf32> to vector<8x128xbf16>
    %271 = arith.index_cast %c5_i32 : i32 to index
    %c0_101 = arith.constant 0 : index
    %c0_102 = arith.constant 0 : index
    %272 = vector.load %arg7[%271, %c0_101, %c0_102] : memref<8x8x128xbf16, #tpu.memory_space<vmem>>, vector<1x8x128xbf16>
    %273 = vector.shape_cast %272 : vector<1x8x128xbf16> to vector<8x128xbf16>
    %274 = vector.shape_cast %270 : vector<8x128xbf16> to vector<1x8x128xbf16>
    tpu.vector_store %arg7[%271, %c0_101, %c0_102], %274 {strides = array<i32>} : memref<8x8x128xbf16, #tpu.memory_space<vmem>>, vector<1x8x128xbf16>,
    %c6_i32 = arith.constant 6 : i32
    %275 = arith.index_cast %c6_i32 : i32 to index
    %c0_103 = arith.constant 0 : index
    %c0_104 = arith.constant 0 : index
    %276 = vector.load %arg10[%275, %c0_103, %c0_104] : memref<8x8x512xf32, #tpu.memory_space<vmem>>, vector<1x8x512xf32>
    %277 = vector.shape_cast %276 : vector<1x8x512xf32> to vector<8x512xf32>
    %278 = arith.truncf %268 : vector<8x128xf32> to vector<8x128xbf16>
    %cst_105 = arith.constant dense<0.000000e+00> : vector<8x512xf32>
    %279 = tpu.matmul %278, %13, %cst_105 {dimension_numbers = #tpu.dot_dimension_numbers<[1], [0], [0], [1], [0, 0, 1, 1], [], []>} : vector<8x128xbf16>, vector<128x512xbf16>, vector<8x512xf32> -> vector<8x512xf32>
    %280 = arith.addf %277, %279 : vector<8x512xf32>
    %281 = vector.extract_strided_slice %280 {offsets = [0, 0], sizes = [8, 128], strides = [1, 1]} : vector<8x512xf32> to vector<8x128xf32>
    %cst_106 = arith.constant 5.000000e-01 : f32
    %282 = vector.broadcast %cst_106 : f32 to vector<8x128xf32>
    %283 = arith.mulf %282, %281 : vector<8x128xf32>
    %284 = math.tanh %283 : vector<8x128xf32>
    %cst_107 = arith.constant 1.000000e+00 : f32
    %285 = vector.broadcast %cst_107 : f32 to vector<8x128xf32>
    %286 = arith.addf %284, %285 : vector<8x128xf32>
    %cst_108 = arith.constant 5.000000e-01 : f32
    %287 = vector.broadcast %cst_108 : f32 to vector<8x128xf32>
    %288 = arith.mulf %287, %286 : vector<8x128xf32>
    %289 = vector.extract_strided_slice %280 {offsets = [0, 128], sizes = [8, 128], strides = [1, 1]} : vector<8x512xf32> to vector<8x128xf32>
    %cst_109 = arith.constant 5.000000e-01 : f32
    %290 = vector.broadcast %cst_109 : f32 to vector<8x128xf32>
    %291 = arith.mulf %290, %289 : vector<8x128xf32>
    %292 = math.tanh %291 : vector<8x128xf32>
    %cst_110 = arith.constant 1.000000e+00 : f32
    %293 = vector.broadcast %cst_110 : f32 to vector<8x128xf32>
    %294 = arith.addf %292, %293 : vector<8x128xf32>
    %cst_111 = arith.constant 5.000000e-01 : f32
    %295 = vector.broadcast %cst_111 : f32 to vector<8x128xf32>
    %296 = arith.mulf %295, %294 : vector<8x128xf32>
    %297 = vector.extract_strided_slice %280 {offsets = [0, 256], sizes = [8, 128], strides = [1, 1]} : vector<8x512xf32> to vector<8x128xf32>
    %298 = math.tanh %297 : vector<8x128xf32>
    %299 = vector.extract_strided_slice %280 {offsets = [0, 384], sizes = [8, 128], strides = [1, 1]} : vector<8x512xf32> to vector<8x128xf32>
    %cst_112 = arith.constant 5.000000e-01 : f32
    %300 = vector.broadcast %cst_112 : f32 to vector<8x128xf32>
    %301 = arith.mulf %300, %299 : vector<8x128xf32>
    %302 = math.tanh %301 : vector<8x128xf32>
    %cst_113 = arith.constant 1.000000e+00 : f32
    %303 = vector.broadcast %cst_113 : f32 to vector<8x128xf32>
    %304 = arith.addf %302, %303 : vector<8x128xf32>
    %cst_114 = arith.constant 5.000000e-01 : f32
    %305 = vector.broadcast %cst_114 : f32 to vector<8x128xf32>
    %306 = arith.mulf %305, %304 : vector<8x128xf32>
    %307 = arith.mulf %296, %266 : vector<8x128xf32>
    %308 = arith.mulf %288, %298 : vector<8x128xf32>
    %309 = arith.addf %307, %308 : vector<8x128xf32>
    %310 = math.tanh %309 : vector<8x128xf32>
    %311 = arith.mulf %306, %310 : vector<8x128xf32>
    %312 = arith.mulf %311, %14 : vector<8x128xf32>
    %313 = arith.truncf %312 : vector<8x128xf32> to vector<8x128xbf16>
    %314 = arith.index_cast %c6_i32 : i32 to index
    %c0_115 = arith.constant 0 : index
    %c0_116 = arith.constant 0 : index
    %315 = vector.load %arg7[%314, %c0_115, %c0_116] : memref<8x8x128xbf16, #tpu.memory_space<vmem>>, vector<1x8x128xbf16>
    %316 = vector.shape_cast %315 : vector<1x8x128xbf16> to vector<8x128xbf16>
    %317 = vector.shape_cast %313 : vector<8x128xbf16> to vector<1x8x128xbf16>
    tpu.vector_store %arg7[%314, %c0_115, %c0_116], %317 {strides = array<i32>} : memref<8x8x128xbf16, #tpu.memory_space<vmem>>, vector<1x8x128xbf16>,
    %c7_i32 = arith.constant 7 : i32
    %318 = arith.index_cast %c7_i32 : i32 to index
    %c0_117 = arith.constant 0 : index
    %c0_118 = arith.constant 0 : index
    %319 = vector.load %arg10[%318, %c0_117, %c0_118] : memref<8x8x512xf32, #tpu.memory_space<vmem>>, vector<1x8x512xf32>
    %320 = vector.shape_cast %319 : vector<1x8x512xf32> to vector<8x512xf32>
    %321 = arith.truncf %311 : vector<8x128xf32> to vector<8x128xbf16>
    %cst_119 = arith.constant dense<0.000000e+00> : vector<8x512xf32>
    %322 = tpu.matmul %321, %13, %cst_119 {dimension_numbers = #tpu.dot_dimension_numbers<[1], [0], [0], [1], [0, 0, 1, 1], [], []>} : vector<8x128xbf16>, vector<128x512xbf16>, vector<8x512xf32> -> vector<8x512xf32>
    %323 = arith.addf %320, %322 : vector<8x512xf32>
    %324 = vector.extract_strided_slice %323 {offsets = [0, 0], sizes = [8, 128], strides = [1, 1]} : vector<8x512xf32> to vector<8x128xf32>
    %cst_120 = arith.constant 5.000000e-01 : f32
    %325 = vector.broadcast %cst_120 : f32 to vector<8x128xf32>
    %326 = arith.mulf %325, %324 : vector<8x128xf32>
    %327 = math.tanh %326 : vector<8x128xf32>
    %cst_121 = arith.constant 1.000000e+00 : f32
    %328 = vector.broadcast %cst_121 : f32 to vector<8x128xf32>
    %329 = arith.addf %327, %328 : vector<8x128xf32>
    %cst_122 = arith.constant 5.000000e-01 : f32
    %330 = vector.broadcast %cst_122 : f32 to vector<8x128xf32>
    %331 = arith.mulf %330, %329 : vector<8x128xf32>
    %332 = vector.extract_strided_slice %323 {offsets = [0, 128], sizes = [8, 128], strides = [1, 1]} : vector<8x512xf32> to vector<8x128xf32>
    %cst_123 = arith.constant 5.000000e-01 : f32
    %333 = vector.broadcast %cst_123 : f32 to vector<8x128xf32>
    %334 = arith.mulf %333, %332 : vector<8x128xf32>
    %335 = math.tanh %334 : vector<8x128xf32>
    %cst_124 = arith.constant 1.000000e+00 : f32
    %336 = vector.broadcast %cst_124 : f32 to vector<8x128xf32>
    %337 = arith.addf %335, %336 : vector<8x128xf32>
    %cst_125 = arith.constant 5.000000e-01 : f32
    %338 = vector.broadcast %cst_125 : f32 to vector<8x128xf32>
    %339 = arith.mulf %338, %337 : vector<8x128xf32>
    %340 = vector.extract_strided_slice %323 {offsets = [0, 256], sizes = [8, 128], strides = [1, 1]} : vector<8x512xf32> to vector<8x128xf32>
    %341 = math.tanh %340 : vector<8x128xf32>
    %342 = vector.extract_strided_slice %323 {offsets = [0, 384], sizes = [8, 128], strides = [1, 1]} : vector<8x512xf32> to vector<8x128xf32>
    %cst_126 = arith.constant 5.000000e-01 : f32
    %343 = vector.broadcast %cst_126 : f32 to vector<8x128xf32>
    %344 = arith.mulf %343, %342 : vector<8x128xf32>
    %345 = math.tanh %344 : vector<8x128xf32>
    %cst_127 = arith.constant 1.000000e+00 : f32
    %346 = vector.broadcast %cst_127 : f32 to vector<8x128xf32>
    %347 = arith.addf %345, %346 : vector<8x128xf32>
    %cst_128 = arith.constant 5.000000e-01 : f32
    %348 = vector.broadcast %cst_128 : f32 to vector<8x128xf32>
    %349 = arith.mulf %348, %347 : vector<8x128xf32>
    %350 = arith.mulf %339, %309 : vector<8x128xf32>
    %351 = arith.mulf %331, %341 : vector<8x128xf32>
    %352 = arith.addf %350, %351 : vector<8x128xf32>
    %353 = math.tanh %352 : vector<8x128xf32>
    %354 = arith.mulf %349, %353 : vector<8x128xf32>
    %355 = arith.mulf %354, %14 : vector<8x128xf32>
    %356 = arith.truncf %355 : vector<8x128xf32> to vector<8x128xbf16>
    %357 = arith.index_cast %c7_i32 : i32 to index
    %c0_129 = arith.constant 0 : index
    %c0_130 = arith.constant 0 : index
    %358 = vector.load %arg7[%357, %c0_129, %c0_130] : memref<8x8x128xbf16, #tpu.memory_space<vmem>>, vector<1x8x128xbf16>
    %359 = vector.shape_cast %358 : vector<1x8x128xbf16> to vector<8x128xbf16>
    %360 = vector.shape_cast %356 : vector<8x128xbf16> to vector<1x8x128xbf16>
    tpu.vector_store %arg7[%357, %c0_129, %c0_130], %360 {strides = array<i32>} : memref<8x8x128xbf16, #tpu.memory_space<vmem>>, vector<1x8x128xbf16>,
    %c8_i32 = arith.constant 8 : i32
    %c0_131 = arith.constant 0 : index
    %c0_132 = arith.constant 0 : index
    %361 = vector.load %arg8[%c0_131, %c0_132] : memref<8x128xf32, #tpu.memory_space<vmem>>, vector<8x128xf32>
    tpu.vector_store %arg8[%c0_131, %c0_132], %354 {strides = array<i32>} : memref<8x128xf32, #tpu.memory_space<vmem>>, vector<8x128xf32>,
    %c0_133 = arith.constant 0 : index
    %c0_134 = arith.constant 0 : index
    %362 = vector.load %arg9[%c0_133, %c0_134] : memref<8x128xf32, #tpu.memory_space<vmem>>, vector<8x128xf32>
    tpu.vector_store %arg9[%c0_133, %c0_134], %352 {strides = array<i32>} : memref<8x128xf32, #tpu.memory_space<vmem>>, vector<8x128xf32>,
    return
  }
  func.func @transform_0(%arg0: i32, %arg1: i32) -> (i32, i32, i32) {
    %c0_i32 = arith.constant 0 : i32
    %c0_i32_0 = arith.constant 0 : i32
    return %arg1, %arg0, %c0_i32 : i32, i32, i32
  }
  func.func @transform_1(%arg0: i32, %arg1: i32) -> (i32, i32) {
    %c0_i32 = arith.constant 0 : i32
    %c0_i32_0 = arith.constant 0 : i32
    %c0_i32_1 = arith.constant 0 : i32
    return %c0_i32, %c0_i32_0 : i32, i32
  }
  func.func @transform_2(%arg0: i32, %arg1: i32) -> (i32, i32) {
    %c0_i32 = arith.constant 0 : i32
    %c0_i32_0 = arith.constant 0 : i32
    %c0_i32_1 = arith.constant 0 : i32
    return %c0_i32, %c0_i32_0 : i32, i32
  }
  func.func @transform_3(%arg0: i32, %arg1: i32) -> (i32, i32) {
    %c0_i32 = arith.constant 0 : i32
    %c0_i32_0 = arith.constant 0 : i32
    %c0_i32_1 = arith.constant 0 : i32
    return %c0_i32, %c0_i32_0 : i32, i32
  }
  func.func @transform_4(%arg0: i32, %arg1: i32) -> (i32, i32) {
    %c0_i32 = arith.constant 0 : i32
    %c0_i32_0 = arith.constant 0 : i32
    return %arg0, %c0_i32 : i32, i32
  }
  func.func @transform_5(%arg0: i32, %arg1: i32) -> (i32, i32, i32) {
    %c0_i32 = arith.constant 0 : i32
    %c0_i32_0 = arith.constant 0 : i32
    return %arg1, %arg0, %c0_i32 : i32, i32, i32
  }
}

</mosaic_0001>

<bundles_post_ra>
// kernel: tpu_custom_call.1
= control target key start
LH: loop header
LB: loop body
LE: loop exit
PB: predicated region body
PF: predicated region fallthrough
CT: control target
= control target key end

     0   :  { %6 = vsyncpa [#allocation3], 0  ;;  %s440_s0 = inlined_call_operand.hbm [shape: f32[8,128], index: 0, kind: input, shape index: {}]   ;;  %s441_s1 = inlined_call_operand.hbm [shape: f32[16,128], index: 1, kind: output, shape index: {}]  }
   0x1   :  { %7 = vsyncpa [#allocation4], 0 }
   0x2   :  { %9 = vsyncpa [#allocation4 + $0x1], 0  ;;  %s356_s6 = smov 0   ;;  %s358_s7 = smov 0  }
   0x3   :  { %s360_s8 = smov 0   ;;  %s362_s9 = smov 0  }
   0x4 LB: > { %s377_s10 = sadd.s32 4294967295, %s343_s9   ;;  %s187_s11 = sadd.s32 4294967294, %s343_s9   ;;  %s343_s9 = sphi %s362_s9, %s447_s9   ;;  %s339_s8 = sphi %s360_s8, %s446_s8   ;;  %s335_s7 = sphi %s358_s7, %s445_s7   ;;  %s331_s6 = sphi %s356_s6, %s444_s6  }
   0x5   : > { %s381_s12 = sadd.s32 1, %s343_s9   ;;  %s43_s13 = sadd.s32 1, %s339_s8 }
   0x6   : > { %s40_s14 = ssub.s32 %s343_s9, %s381_s12  ;;  %p53_p0 = scmp.ne.s32.totalorder %s339_s8, %s335_s7 }
   0x7   : > { %p41_p1 = scmp.eq.s32.totalorder %s40_s14, 0  ;;  %p54_p2 = scmp.eq.s32.totalorder %s377_s10, 1 }
   0x8   : > { %p59_p3 = scmp.ne.s32.totalorder %s335_s7, %s331_s6  ;;  %p60_p4 = scmp.eq.s32.totalorder %s187_s11, 1 }
   0x9   : > { %s392_s15 = scalar_select %p41_p1, %s339_s8, %s43_s13  }
   0xa   : > { %p394_p5 = por %p54_p2, %p53_p0  ;;  %p398_p6 = por %p60_p4, %p59_p3 }
   0xb   : > { %p188_p7 = scmp.ge.s32.totalorder %s343_s9, 1  ;;  %p67_p8 = scmp.lt.s32.totalorder %s343_s9, 3 }
   0xc   : > { %p211_p9 = scmp.eq.s32.totalorder %s377_s10, 0  ;;  %s79_s20 = sshll.u32 %s440_s0, 4  ;;  %s80_s20 = int_to_ptr.hbm [resolvable:$true] %s79_s20 }
   0xd   : > { %p68_p10 = pnand %p188_p7, %p67_p8  ;;  %s345_s21 = smov [#allocation2]  }
   0xe   : > { %s81_s22 = sshll.u32 %s345_s21, 4  ;;  %s82_s22 = int_to_ptr.vmem [resolvable:$true] %s81_s22 }
   0xf   : > { %p203_p11 = pneg %p68_p10  ;;  %94 = sbr.rel (%p68_p10) target bundleno = 37 (0x25), region = 24 }
  0x11   : > { %p204_p12 = pnand %p211_p9, %p203_p11 }
  0x13   : > { %206 = dma.hbm_to_vmem [thread:$0]  (!%p204_p12), %s80_s20, 128, %s82_s22, [#allocation3]  }
  0x14   : > { %322 = dma.done.wait (%p211_p9), [#allocation3], 128  }
  0x15   : > { %324 = vsyncadd (%p211_p9), [#allocation3], 4294967168  ;;  %s107_s23 = sand.u32 1, %s335_s7   ;;  %s194_s24 = sshll.u32 %s377_s10, 3  ;;  %v110_v0 = vld [vmem:[#allocation2] sm:$0xff] }
  0x16   : > { %s192_s25 = sshll.u32 %s107_s23, 3  ;;  %s123_s28 = scalar_lea.hbm %s441_s1, %s194_s24 }
  0x17   : > { %s109_s29 = scalar_lea.vmem [#allocation5], %s192_s25  ;;  %s127_s2 = sshll.u32 %s123_s28, 4  ;;  %s128_s2 = int_to_ptr.hbm [resolvable:$true] %s127_s2 }
  0x18   : > { %s125_s30 = sshll.u32 %s109_s29, 4  ;;  %111 = vst [vmem:[%s109_s29] sm:$0xff] %v110_v0  ;;  %s113_s3 = scalar_lea.sflag [#allocation4], %s107_s23  ;;  %s126_s30 = int_to_ptr.vmem [resolvable:$true] %s125_s30 }
  0x19   : > { %s291_s4 = sshra.s32 %s128_s2, 4  ;;  %s297_s13 = scalar_lea.hbm %s441_s1, 16  ;;  %s292_s4 = int_to_ptr.hbm [resolvable:$true] %s291_s4 }
  0x1a   : > { %s293_s5 = scalar_lea.hbm %s292_s4, 8  ;;  %p298_p2 = scmp.lt.s32.totalorder %s292_s4, %s441_s1 }
  0x1b   : > { %p294_p13 = scmp.ne.s32.totalorder %s292_s4, %s293_s5  ;;  %p299_p3 = scmp.lt.s32.totalorder %s297_s13, %s293_s5 }
  0x1d   : > { %p295_p0 = pnand %p294_p13, %p394_p5  ;;  %p300_p4 = por %p299_p3, %p298_p2 }
  0x1f   : > { %p296_p1 = pneg %p295_p0 }
  0x21   : > { %p301_p7 = pnand %p300_p4, %p296_p1 }
  0x23   : > { %304 = shalt.err (!%p301_p7)
}
  0x24   : > { %201 = dma.vmem_to_hbm [thread:$0]  (%p394_p5), %s126_s30, 128, %s128_s2, %s113_s3  }
  0x25 PF: > { %p213_p8 = scmp.ge.s32.totalorder %s343_s9, 2  ;;  %s139_s19 = sand.u32 1, %s331_s6  }
  0x26   : > { %s140_s20 = scalar_lea.sflag [#allocation4], %s139_s19 }
  0x27   : > { %p208_p9 = pnand %p213_p8, %p398_p6 }
  0x29   : > { %p209_p10 = pneg %p208_p9 }
  0x2b   : > { %326 = dma.done.wait (%p209_p10), %s140_s20, 128  }
  0x2c   : > { %328 = vsyncadd (%p209_p10), %s140_s20, 4294967168  ;;  %p12_p11 = scmp.ge.s32.totalorder %s381_s12, 4   ;;  %s444_s6 = smov %s335_s7 }
  0x2d   : > { %s445_s7 = smov %s339_s8  ;;  %s446_s8 = smov %s392_s15 }
  0x2e   : > { %s447_s9 = smov %s381_s12  ;;  %14 = sbr.rel (!%p12_p11) target bundleno = 4 (0x4), region = 61 }
  0x33   :  { %146 = vsyncpa [#allocation3], 1 }
  0x34   :  { %148 = vsyncpa [#allocation3 + $0x1], 1 }
  0x35   :  { %149 = vsyncpa [#allocation4], 1 }
  0x36   :  { %151 = vsyncpa [#allocation4 + $0x1], 1 }

// kernel: forward.3
= control target key start
LH: loop header
LB: loop body
LE: loop exit
PB: predicated region body
PF: predicated region fallthrough
CT: control target
= control target key end

     0   :  { %s378_s1 = inlined_call_operand.vmem [shape: bf16[128,128], index: 1, kind: input, shape index: {}]   ;;  %s379_s2 = inlined_call_operand.vmem [shape: f32[1,128], index: 2, kind: input, shape index: {}]   ;;  %s380_s0 = inlined_call_operand.vmem [shape: bf16[64,128], index: 0, kind: input, shape index: {}]   ;;  %s381_s3 = inlined_call_operand.vmem [shape: f32[64,128], index: 3, kind: output, shape index: {}]  }
   0x1   :  { %v269_v0 = vld [vmem:[%s378_s1 + $0x38] sm:$0xff]  ;;  %v268_v1 = vld [vmem:[%s378_s1 + $0x30] sm:$0xff]  ;;  %v267_v2 = vld [vmem:[%s378_s1 + $0x28] sm:$0xff] }
   0x2   :  { %130 = vmatpush.bf16.msra.mxu0 %v269_v0  ;;  %270 = vmatpush.bf16.msra.mxu1 %v269_v0  ;;  %v266_v3 = vld [vmem:[%s378_s1 + $0x20] sm:$0xff]  ;;  %v265_v4 = vld [vmem:[%s378_s1 + $0x18] sm:$0xff]  ;;  %v264_v5 = vld [vmem:[%s378_s1 + $0x10] sm:$0xff] }
   0x3   :  { %271 = vmatpush.bf16.msra.mxu2 %v269_v0  ;;  %272 = vmatpush.bf16.msra.mxu3 %v269_v0  ;;  %v263_v6 = vld [vmem:[%s378_s1 + $0x8] sm:$0xff]  ;;  %v262_v7 = vld [vmem:[%s378_s1] sm:$0xff]  ;;  %v260_v10 = vld [vmem:[%s380_s0 + $0x10] sm:$0xff] }
   0x4   :  { %v258_v8 = vld [vmem:[%s380_s0] sm:$0xff]  ;;  %v259_v9 = vld [vmem:[%s380_s0 + $0x8] sm:$0xff]  ;;  %v261_v11 = vld [vmem:[%s380_s0 + $0x18] sm:$0xff] }
   0x5   :  { %v294_v12 = vld [vmem:[%s379_s2] ss:$0 sm:$0xff] }
   0x6   :  { %131 = vmatpush.bf16.msra.mxu0 %v268_v1  ;;  %273 = vmatpush.bf16.msra.mxu1 %v268_v1 }
   0x7   :  { %274 = vmatpush.bf16.msra.mxu2 %v268_v1  ;;  %275 = vmatpush.bf16.msra.mxu3 %v268_v1 }
   0xa   :  { %132 = vmatpush.bf16.msra.mxu0 %v267_v2  ;;  %276 = vmatpush.bf16.msra.mxu1 %v267_v2 }
   0xb   :  { %277 = vmatpush.bf16.msra.mxu2 %v267_v2  ;;  %278 = vmatpush.bf16.msra.mxu3 %v267_v2 }
   0xe   :  { %133 = vmatpush.bf16.msra.mxu0 %v266_v3  ;;  %279 = vmatpush.bf16.msra.mxu1 %v266_v3 }
   0xf   :  { %280 = vmatpush.bf16.msra.mxu2 %v266_v3  ;;  %281 = vmatpush.bf16.msra.mxu3 %v266_v3 }
  0x12   :  { %134 = vmatpush.bf16.msra.mxu0 %v265_v4  ;;  %282 = vmatpush.bf16.msra.mxu1 %v265_v4 }
  0x13   :  { %283 = vmatpush.bf16.msra.mxu2 %v265_v4  ;;  %284 = vmatpush.bf16.msra.mxu3 %v265_v4 }
  0x16   :  { %135 = vmatpush.bf16.msra.mxu0 %v264_v5  ;;  %285 = vmatpush.bf16.msra.mxu1 %v264_v5 }
  0x17   :  { %286 = vmatpush.bf16.msra.mxu2 %v264_v5  ;;  %287 = vmatpush.bf16.msra.mxu3 %v264_v5 }
  0x1a   :  { %136 = vmatpush.bf16.msra.mxu0 %v263_v6  ;;  %288 = vmatpush.bf16.msra.mxu1 %v263_v6 }
  0x1b   :  { %289 = vmatpush.bf16.msra.mxu2 %v263_v6  ;;  %290 = vmatpush.bf16.msra.mxu3 %v263_v6 }
  0x1e   :  { %137 = vmatpush.bf16.msra.mxu0 %v262_v7  ;;  %291 = vmatpush.bf16.msra.mxu1 %v262_v7 }
  0x1f   :  { %292 = vmatpush.bf16.msra.mxu2 %v262_v7  ;;  %293 = vmatpush.bf16.msra.mxu3 %v262_v7 }
  0x21   :  { %138 = vmatmul.bf16.vlgmr.msra.gmra.mxu0 %v258_v8  ;;  %143 = vmatmul.bf16.vlgmr.msra.gmra.mxu1 %v259_v9 }
  0x22   :  { %148 = vmatmul.bf16.vlgmr.msra.gmra.mxu2 %v260_v10  ;;  %153 = vmatmul.bf16.vlgmr.msra.gmra.mxu3 %v261_v11 }
  0x9e   :  { %v139_v13 = vpop.f32.mrf.mxu0  ;;  %v144_v14 = vpop.f32.mrf.mxu1 }
  0x9f   :  { %v190_v15 = vadd.f32 %v294_v12, %v139_v13  ;;  %v192_v16 = vadd.f32 %v294_v12, %v144_v14 }
  0xa1   :  { %198 = vst [vmem:[%s381_s3] sm:$0xff] %v190_v15 }
  0xa2   :  { %200 = vst [vmem:[%s381_s3 + $0x10] sm:$0xff] %v192_v16 }
  0xa5   :  { %v149_v17 = vpop.f32.mrf.mxu2  ;;  %v154_v18 = vpop.f32.mrf.mxu3 }
  0xa6   :  { %v194_v19 = vadd.f32 %v294_v12, %v149_v17  ;;  %v196_v20 = vadd.f32 %v294_v12, %v154_v18  ;;  %v141_v21 = vpop.f32.mrf.mxu0  ;;  %v146_v22 = vpop.f32.mrf.mxu1 }
  0xa7   :  { %v191_v23 = vadd.f32 %v294_v12, %v141_v21  ;;  %v193_v24 = vadd.f32 %v294_v12, %v146_v22 }
  0xa8   :  { %202 = vst [vmem:[%s381_s3 + $0x20] sm:$0xff] %v194_v19 }
  0xa9   :  { %204 = vst [vmem:[%s381_s3 + $0x30] sm:$0xff] %v196_v20 }
  0xaa   :  { %199 = vst [vmem:[%s381_s3 + $0x8] sm:$0xff] %v191_v23 }
  0xab   :  { %201 = vst [vmem:[%s381_s3 + $0x18] sm:$0xff] %v193_v24 }
  0xad   :  { %v151_v25 = vpop.f32.mrf.mxu2  ;;  %v156_v26 = vpop.f32.mrf.mxu3 }
  0xae   :  { %v195_v27 = vadd.f32 %v294_v12, %v151_v25  ;;  %v197_v28 = vadd.f32 %v294_v12, %v156_v26 }
  0xb0   :  { %203 = vst [vmem:[%s381_s3 + $0x28] sm:$0xff] %v195_v27 }
  0xb1   :  { %205 = vst [vmem:[%s381_s3 + $0x38] sm:$0xff] %v197_v28 }

// kernel: forward.2
= control target key start
LH: loop header
LB: loop body
LE: loop exit
PB: predicated region body
PF: predicated region fallthrough
CT: control target
= control target key end

     0   :  { %10 = vsyncpa [#allocation6], 0  ;;  %s1785_s21 = smov [#allocation5]   ;;  %s1786_s23 = smov 256   ;;  %s2516_s0 = inlined_call_operand.vmem [shape: bf16[8,8,128], index: 0, kind: input, shape index: {}]   ;;  %s2517_s1 = inlined_call_operand.hbm [shape: bf16[128,512], index: 1, kind: input, shape index: {}]   ;;  %s2518_s2 = inlined_call_operand.vmem [shape: bf16[128,512], index: 2, kind: input, shape index: {}]   ;;  %s2519_s3 = inlined_call_operand.vmem [shape: f32[1,512], index: 3, kind: input, shape index: {}]   ;;  %s2520_s4 = inlined_call_operand.vmem [shape: f32[8,128], index: 4, kind: input, shape index: {}]   ;;  %s2521_s5 = inlined_call_operand.vmem [shape: bf16[8,8,128], index: 5, kind: output, shape index: {}]  }
   0x1   :  { %s17_s20 = sshll.u32 %s2517_s1, 4  ;;  %s19_s22 = sshll.u32 %s1785_s21, 4  ;;  %s18_s20 = int_to_ptr.hbm [resolvable:$true] %s17_s20  ;;  %s20_s22 = int_to_ptr.vmem [resolvable:$true] %s19_s22 }
   0x2   :  { %s1787_s24 = smov 16  }
   0x3   :  { %25 = dma.hbm_to_vmem [thread:$0]  %s18_s20, 4096, %s20_s22, [#allocation6], %s1786_s23, %s1786_s23, %s1787_s24  }
   0x4   :  { %1783 = dma.done.wait [#allocation6], 4096  }
   0x5   :  { %1784 = vsyncadd [#allocation6], 4294963200  ;;  %v1458_v0 = vld [vmem:[#allocation5 + $0xe0] sm:$0xf]  ;;  %v1641_v1 = vld [vmem:[#allocation5 + $0xec] sm:$0xf0] }
   0x6   :  { %v1639_v2 = vld [vmem:[#allocation5 + $0xe4] sm:$0xf]  ;;  %v1459_v3 = vor.u32 %v1641_v1, %v1458_v0  ;;  %v1460_v4 = vld [vmem:[#allocation5 + $0xf0] sm:$0xf0]  ;;  %v1466_v5 = vld [vmem:[#allocation5 + $0xe8] sm:$0xf] }
   0x7   :  { %v1642_v6 = vld [vmem:[#allocation5 + $0xf4] sm:$0xf0]  ;;  %v1463_v7 = vor.u32 %v1639_v2, %v1460_v4  ;;  %v1640_v9 = vld [vmem:[#allocation5 + $0xec] sm:$0xf]  ;;  %v1468_v10 = vld [vmem:[#allocation5 + $0xf8] sm:$0xf0] }
   0x8   :  { %v1467_v8 = vor.u32 %v1642_v6, %v1466_v5  ;;  %v1442_v11 = vld [vmem:[#allocation5 + $0xc0] sm:$0xf]  ;;  %266 = vmatpush.bf16.msra.mxu0 %v1459_v3  ;;  %v1471_v12 = vor.u32 %v1640_v9, %v1468_v10  ;;  %v1637_v13 = vld [vmem:[#allocation5 + $0xcc] sm:$0xf0]  ;;  %v1635_v14 = vld [vmem:[#allocation5 + $0xc4] sm:$0xf] }
   0x9   :  { %v1444_v15 = vld [vmem:[#allocation5 + $0xd0] sm:$0xf0]  ;;  %295 = vmatpush.bf16.msra.mxu1 %v1463_v7  ;;  %v1443_v16 = vor.u32 %v1637_v13, %v1442_v11  ;;  %v1450_v18 = vld [vmem:[#allocation5 + $0xc8] sm:$0xf]  ;;  %v1638_v19 = vld [vmem:[#allocation5 + $0xd4] sm:$0xf0] }
   0xa   :  { %324 = vmatpush.bf16.msra.mxu2 %v1467_v8  ;;  %v1447_v17 = vor.u32 %v1635_v14, %v1444_v15  ;;  %v1636_v20 = vld [vmem:[#allocation5 + $0xcc] sm:$0xf]  ;;  %353 = vmatpush.bf16.msra.mxu3 %v1471_v12  ;;  %v1451_v21 = vor.u32 %v1638_v19, %v1450_v18  ;;  %v1452_v22 = vld [vmem:[#allocation5 + $0xd8] sm:$0xf0]  ;;  %v1426_v23 = vld [vmem:[#allocation5 + $0xa0] sm:$0xf] }
   0xb   :  { %v1633_v24 = vld [vmem:[#allocation5 + $0xac] sm:$0xf0]  ;;  %v1455_v25 = vor.u32 %v1636_v20, %v1452_v22  ;;  %v1631_v26 = vld [vmem:[#allocation5 + $0xa4] sm:$0xf]  ;;  %v1428_v27 = vld [vmem:[#allocation5 + $0xb0] sm:$0xf0] }
   0xc   :  { %v1434_v28 = vld [vmem:[#allocation5 + $0xa8] sm:$0xf]  ;;  %267 = vmatpush.bf16.msra.mxu0 %v1443_v16  ;;  %v1427_v29 = vor.u32 %v1633_v24, %v1426_v23  ;;  %v1634_v30 = vld [vmem:[#allocation5 + $0xb4] sm:$0xf0]  ;;  %v1632_v31 = vld [vmem:[#allocation5 + $0xac] sm:$0xf]  ;;  %v1431_v33 = vor.u32 %v1631_v26, %v1428_v27 }
   0xd   :  { %v1436_v32 = vld [vmem:[#allocation5 + $0xb8] sm:$0xf0]  ;;  %296 = vmatpush.bf16.msra.mxu1 %v1447_v17  ;;  %v1435_v34 = vor.u32 %v1634_v30, %v1434_v28  ;;  %v1410_v35 = vld [vmem:[#allocation5 + $0x80] sm:$0xf]  ;;  %v1629_v36 = vld [vmem:[#allocation5 + $0x8c] sm:$0xf0] }
   0xe   :  { %325 = vmatpush.bf16.msra.mxu2 %v1451_v21  ;;  %v1627_v37 = vld [vmem:[#allocation5 + $0x84] sm:$0xf]  ;;  %354 = vmatpush.bf16.msra.mxu3 %v1455_v25  ;;  %v1439_v38 = vor.u32 %v1632_v31, %v1436_v32  ;;  %v1412_v39 = vld [vmem:[#allocation5 + $0x90] sm:$0xf0]  ;;  %v1418_v40 = vld [vmem:[#allocation5 + $0x88] sm:$0xf]  ;;  %v1411_v44 = vor.u32 %v1629_v36, %v1410_v35 }
   0xf   :  { %v1630_v41 = vld [vmem:[#allocation5 + $0x94] sm:$0xf0]  ;;  %v1628_v42 = vld [vmem:[#allocation5 + $0x8c] sm:$0xf]  ;;  %v1420_v43 = vld [vmem:[#allocation5 + $0x98] sm:$0xf0]  ;;  %v1415_v45 = vor.u32 %v1627_v37, %v1412_v39 }
  0x10   :  { %268 = vmatpush.bf16.msra.mxu0 %v1427_v29  ;;  %v1419_v46 = vor.u32 %v1630_v41, %v1418_v40  ;;  %v1394_v47 = vld [vmem:[#allocation5 + $0x60] sm:$0xf]  ;;  %v1625_v48 = vld [vmem:[#allocation5 + $0x6c] sm:$0xf0]  ;;  %v1623_v49 = vld [vmem:[#allocation5 + $0x64] sm:$0xf]  ;;  %v1423_v50 = vor.u32 %v1628_v42, %v1420_v43 }
  0x11   :  { %297 = vmatpush.bf16.msra.mxu1 %v1431_v33  ;;  %v1396_v51 = vld [vmem:[#allocation5 + $0x70] sm:$0xf0]  ;;  %v1402_v52 = vld [vmem:[#allocation5 + $0x68] sm:$0xf]  ;;  %v1626_v53 = vld [vmem:[#allocation5 + $0x74] sm:$0xf0]  ;;  %v1395_v56 = vor.u32 %v1625_v48, %v1394_v47 }
  0x12   :  { %326 = vmatpush.bf16.msra.mxu2 %v1435_v34  ;;  %355 = vmatpush.bf16.msra.mxu3 %v1439_v38  ;;  %v1624_v54 = vld [vmem:[#allocation5 + $0x6c] sm:$0xf]  ;;  %v1404_v55 = vld [vmem:[#allocation5 + $0x78] sm:$0xf0]  ;;  %v1399_v57 = vor.u32 %v1623_v49, %v1396_v51  ;;  %v1403_v58 = vor.u32 %v1626_v53, %v1402_v52  ;;  %v1378_v59 = vld [vmem:[#allocation5 + $0x40] sm:$0xf] }
  0x13   :  { %v1621_v60 = vld [vmem:[#allocation5 + $0x4c] sm:$0xf0]  ;;  %v1619_v61 = vld [vmem:[#allocation5 + $0x44] sm:$0xf]  ;;  %v1407_v62 = vor.u32 %v1624_v54, %v1404_v55  ;;  %v1380_v63 = vld [vmem:[#allocation5 + $0x50] sm:$0xf0] }
  0x14   :  { %269 = vmatpush.bf16.msra.mxu0 %v1411_v44  ;;  %v1386_v0 = vld [vmem:[#allocation5 + $0x48] sm:$0xf]  ;;  %v1622_v1 = vld [vmem:[#allocation5 + $0x54] sm:$0xf0]  ;;  %v1620_v2 = vld [vmem:[#allocation5 + $0x4c] sm:$0xf]  ;;  %v1379_v4 = vor.u32 %v1621_v60, %v1378_v59  ;;  %v1383_v5 = vor.u32 %v1619_v61, %v1380_v63 }
  0x15   :  { %298 = vmatpush.bf16.msra.mxu1 %v1415_v45  ;;  %v1388_v3 = vld [vmem:[#allocation5 + $0x58] sm:$0xf0]  ;;  %v1387_v6 = vor.u32 %v1622_v1, %v1386_v0  ;;  %v1362_v7 = vld [vmem:[#allocation5 + $0x20] sm:$0xf]  ;;  %v1617_v8 = vld [vmem:[#allocation5 + $0x2c] sm:$0xf0] }
  0x16   :  { %327 = vmatpush.bf16.msra.mxu2 %v1419_v46  ;;  %356 = vmatpush.bf16.msra.mxu3 %v1423_v50  ;;  %v1615_v9 = vld [vmem:[#allocation5 + $0x24] sm:$0xf]  ;;  %v1391_v10 = vor.u32 %v1620_v2, %v1388_v3  ;;  %v1364_v11 = vld [vmem:[#allocation5 + $0x30] sm:$0xf0]  ;;  %v1370_v12 = vld [vmem:[#allocation5 + $0x28] sm:$0xf]  ;;  %v1363_v16 = vor.u32 %v1617_v8, %v1362_v7 }
  0x17   :  { %v1618_v13 = vld [vmem:[#allocation5 + $0x34] sm:$0xf0]  ;;  %v1616_v14 = vld [vmem:[#allocation5 + $0x2c] sm:$0xf]  ;;  %v1372_v15 = vld [vmem:[#allocation5 + $0x38] sm:$0xf0]  ;;  %v1367_v18 = vor.u32 %v1615_v9, %v1364_v11 }
  0x18   :  { %270 = vmatpush.bf16.msra.mxu0 %v1395_v56  ;;  %v1346_v17 = vld [vmem:[#allocation5] sm:$0xf]  ;;  %v1371_v19 = vor.u32 %v1618_v13, %v1370_v12  ;;  %v1613_v20 = vld [vmem:[#allocation5 + $0xc] sm:$0xf0]  ;;  %v1611_v21 = vld [vmem:[#allocation5 + $0x4] sm:$0xf]  ;;  %v1375_v23 = vor.u32 %v1616_v14, %v1372_v15 }
  0x19   :  { %299 = vmatpush.bf16.msra.mxu1 %v1399_v57  ;;  %v1348_v22 = vld [vmem:[#allocation5 + $0x10] sm:$0xf0]  ;;  %v1354_v24 = vld [vmem:[#allocation5 + $0x8] sm:$0xf]  ;;  %v1614_v25 = vld [vmem:[#allocation5 + $0x14] sm:$0xf0]  ;;  %v1347_v30 = vor.u32 %v1613_v20, %v1346_v17 }
  0x1a   :  { %328 = vmatpush.bf16.msra.mxu2 %v1403_v58  ;;  %357 = vmatpush.bf16.msra.mxu3 %v1407_v62  ;;  %v1612_v26 = vld [vmem:[#allocation5 + $0xc] sm:$0xf]  ;;  %v1356_v27 = vld [vmem:[#allocation5 + $0x18] sm:$0xf0]  ;;  %v1586_v28 = vld [vmem:[%s2518_s2 + $0xe0] sm:$0xf]  ;;  %v1351_v33 = vor.u32 %v1611_v21, %v1348_v22  ;;  %v1355_v34 = vor.u32 %v1614_v25, %v1354_v24 }
  0x1b   :  { %v1673_v29 = vld [vmem:[%s2518_s2 + $0xec] sm:$0xf0]  ;;  %v1671_v31 = vld [vmem:[%s2518_s2 + $0xe4] sm:$0xf]  ;;  %v1588_v32 = vld [vmem:[%s2518_s2 + $0xf0] sm:$0xf0]  ;;  %v1359_v36 = vor.u32 %v1612_v26, %v1356_v27 }
  0x1c   :  { %271 = vmatpush.bf16.msra.mxu0 %v1379_v4  ;;  %v1607_v35 = vld [vmem:[%s2516_s0] sm:$0xff]  ;;  %v1837_v37 = vor.u32 %v1673_v29, %v1586_v28  ;;  %v1594_v38 = vld [vmem:[%s2518_s2 + $0xe8] sm:$0xf]  ;;  %v1674_v39 = vld [vmem:[%s2518_s2 + $0xf4] sm:$0xf0]  ;;  %v1848_v41 = vor.u32 %v1671_v31, %v1588_v32 }
  0x1d   :  { %300 = vmatpush.bf16.msra.mxu1 %v1383_v5  ;;  %v1672_v40 = vld [vmem:[%s2518_s2 + $0xec] sm:$0xf]  ;;  %v1596_v42 = vld [vmem:[%s2518_s2 + $0xf8] sm:$0xf0]  ;;  %v1570_v43 = vld [vmem:[%s2518_s2 + $0xc0] sm:$0xf]  ;;  %v1865_v47 = vor.u32 %v1674_v39, %v1594_v38 }
  0x1e   :  { %329 = vmatpush.bf16.msra.mxu2 %v1387_v6  ;;  %358 = vmatpush.bf16.msra.mxu3 %v1391_v10  ;;  %v1669_v44 = vld [vmem:[%s2518_s2 + $0xcc] sm:$0xf0]  ;;  %v1667_v45 = vld [vmem:[%s2518_s2 + $0xc4] sm:$0xf]  ;;  %v1572_v46 = vld [vmem:[%s2518_s2 + $0xd0] sm:$0xf0]  ;;  %v1868_v48 = vor.u32 %v1672_v40, %v1596_v42 }
  0x1f   :  { %v1870_v49 = vor.u32 %v1669_v44, %v1570_v43  ;;  %v1578_v50 = vld [vmem:[%s2518_s2 + $0xc8] sm:$0xf]  ;;  %v1670_v51 = vld [vmem:[%s2518_s2 + $0xd4] sm:$0xf0]  ;;  %v1668_v52 = vld [vmem:[%s2518_s2 + $0xcc] sm:$0xf]  ;;  %v1882_v53 = vor.u32 %v1667_v45, %v1572_v46 }
  0x20   :  { %272 = vmatpush.bf16.msra.mxu0 %v1363_v16  ;;  %v1580_v54 = vld [vmem:[%s2518_s2 + $0xd8] sm:$0xf0]  ;;  %v1554_v55 = vld [vmem:[%s2518_s2 + $0xa0] sm:$0xf]  ;;  %v1665_v56 = vld [vmem:[%s2518_s2 + $0xac] sm:$0xf0]  ;;  %v1900_v59 = vor.u32 %v1670_v51, %v1578_v50 }
  0x21   :  { %301 = vmatpush.bf16.msra.mxu1 %v1367_v18  ;;  %v1663_v57 = vld [vmem:[%s2518_s2 + $0xa4] sm:$0xf]  ;;  %v1556_v58 = vld [vmem:[%s2518_s2 + $0xb0] sm:$0xf0]  ;;  %v1904_v60 = vor.u32 %v1668_v52, %v1580_v54  ;;  %v1906_v61 = vor.u32 %v1665_v56, %v1554_v55  ;;  %v1562_v62 = vld [vmem:[%s2518_s2 + $0xa8] sm:$0xf] }
  0x22   :  { %330 = vmatpush.bf16.msra.mxu2 %v1371_v19  ;;  %359 = vmatpush.bf16.msra.mxu3 %v1375_v23  ;;  %v1666_v63 = vld [vmem:[%s2518_s2 + $0xb4] sm:$0xf0]  ;;  %v1664_v0 = vld [vmem:[%s2518_s2 + $0xac] sm:$0xf]  ;;  %v1918_v1 = vor.u32 %v1663_v57, %v1556_v58  ;;  %v1564_v2 = vld [vmem:[%s2518_s2 + $0xb8] sm:$0xf0] }
  0x23   :  { %v1538_v3 = vld [vmem:[%s2518_s2 + $0x80] sm:$0xf]  ;;  %v1661_v4 = vld [vmem:[%s2518_s2 + $0x8c] sm:$0xf0]  ;;  %v1659_v5 = vld [vmem:[%s2518_s2 + $0x84] sm:$0xf]  ;;  %v1936_v7 = vor.u32 %v1666_v63, %v1562_v62  ;;  %v1940_v8 = vor.u32 %v1664_v0, %v1564_v2 }
  0x24   :  { %273 = vmatpush.bf16.msra.mxu0 %v1347_v30  ;;  %v1540_v6 = vld [vmem:[%s2518_s2 + $0x90] sm:$0xf0]  ;;  %v1942_v9 = vor.u32 %v1661_v4, %v1538_v3  ;;  %v1546_v10 = vld [vmem:[%s2518_s2 + $0x88] sm:$0xf]  ;;  %v1662_v11 = vld [vmem:[%s2518_s2 + $0x94] sm:$0xf0] }
  0x25   :  { %302 = vmatpush.bf16.msra.mxu1 %v1351_v33  ;;  %v1660_v12 = vld [vmem:[%s2518_s2 + $0x8c] sm:$0xf]  ;;  %v1954_v13 = vor.u32 %v1659_v5, %v1540_v6  ;;  %v1548_v14 = vld [vmem:[%s2518_s2 + $0x98] sm:$0xf0]  ;;  %v1522_v15 = vld [vmem:[%s2518_s2 + $0x60] sm:$0xf]  ;;  %v1975_v20 = vor.u32 %v1662_v11, %v1546_v10 }
  0x26   :  { %331 = vmatpush.bf16.msra.mxu2 %v1355_v34  ;;  %360 = vmatpush.bf16.msra.mxu3 %v1359_v36  ;;  %v1657_v16 = vld [vmem:[%s2518_s2 + $0x6c] sm:$0xf0]  ;;  %v1655_v17 = vld [vmem:[%s2518_s2 + $0x64] sm:$0xf]  ;;  %v1524_v18 = vld [vmem:[%s2518_s2 + $0x70] sm:$0xf0]  ;;  %v1979_v21 = vor.u32 %v1660_v12, %v1548_v14 }
  0x27   :  { %274 = vmatmul.bf16.vlgmr.msra.gmra.mxu0 %v1607_v35  ;;  %v1608_v19 = vld [vmem:[%s2516_s0 + $0x8] sm:$0xff]  ;;  %v1981_v22 = vor.u32 %v1657_v16, %v1522_v15  ;;  %v1658_v24 = vld [vmem:[%s2518_s2 + $0x74] sm:$0xf0]  ;;  %v1993_v26 = vor.u32 %v1655_v17, %v1524_v18  ;;  %v1532_v27 = vld [vmem:[%s2518_s2 + $0x78] sm:$0xf0]  ;;  %v1788_v18 = vmov 0.0|0.0  }
  0x28   :  { %656 = vmatpush.bf16.msrb.mxu0 %v1837_v37  ;;  %303 = vmatmul.bf16.vlgmr.msra.gmra.mxu1 %v1607_v35  ;;  %v1530_v23 = vld [vmem:[%s2518_s2 + $0x68] sm:$0xf]  ;;  %v1656_v25 = vld [vmem:[%s2518_s2 + $0x6c] sm:$0xf]  ;;  %v1506_v28 = vld [vmem:[%s2518_s2 + $0x40] sm:$0xf] }
  0x29   :  { %669 = vmatpush.bf16.msrb.mxu1 %v1848_v41  ;;  %332 = vmatmul.bf16.vlgmr.msra.gmra.mxu2 %v1607_v35  ;;  %v1653_v29 = vld [vmem:[%s2518_s2 + $0x4c] sm:$0xf0]  ;;  %v1651_v30 = vld [vmem:[%s2518_s2 + $0x44] sm:$0xf]  ;;  %v1508_v31 = vld [vmem:[%s2518_s2 + $0x50] sm:$0xf0]  ;;  %v2011_v32 = vor.u32 %v1658_v24, %v1530_v23  ;;  %v2015_v33 = vor.u32 %v1656_v25, %v1532_v27 }
  0x2a   :  { %361 = vmatmul.bf16.vlgmr.msra.gmra.mxu3 %v1607_v35  ;;  %682 = vmatpush.bf16.msrb.mxu2 %v1865_v47  ;;  %v2017_v34 = vor.u32 %v1653_v29, %v1506_v28  ;;  %v1514_v35 = vld [vmem:[%s2518_s2 + $0x48] sm:$0xf]  ;;  %v1654_v36 = vld [vmem:[%s2518_s2 + $0x54] sm:$0xf0]  ;;  %v2026_v38 = vor.u32 %v1651_v30, %v1508_v31  ;;  %v1652_v39 = vld [vmem:[%s2518_s2 + $0x4c] sm:$0xf] }
  0x2b   :  { %695 = vmatpush.bf16.msrb.mxu3 %v1868_v48  ;;  %v1516_v40 = vld [vmem:[%s2518_s2 + $0x58] sm:$0xf0]  ;;  %v2035_v42 = vor.u32 %v1654_v36, %v1514_v35  ;;  %v1490_v43 = vld [vmem:[%s2518_s2 + $0x20] sm:$0xf]  ;;  %v1649_v44 = vld [vmem:[%s2518_s2 + $0x2c] sm:$0xf0] }
  0x2c   :  { %657 = vmatpush.bf16.msrb.mxu0 %v1870_v49  ;;  %v1647_v45 = vld [vmem:[%s2518_s2 + $0x24] sm:$0xf]  ;;  %v2048_v46 = vor.u32 %v1652_v39, %v1516_v40  ;;  %v2050_v50 = vor.u32 %v1649_v44, %v1490_v43  ;;  %v1492_v51 = vld [vmem:[%s2518_s2 + $0x30] sm:$0xf0]  ;;  %v1498_v52 = vld [vmem:[%s2518_s2 + $0x28] sm:$0xf] }
  0x2d   :  { %670 = vmatpush.bf16.msrb.mxu1 %v1882_v53  ;;  %v1650_v54 = vld [vmem:[%s2518_s2 + $0x34] sm:$0xf0]  ;;  %v2062_v55 = vor.u32 %v1647_v45, %v1492_v51  ;;  %v1648_v56 = vld [vmem:[%s2518_s2 + $0x2c] sm:$0xf]  ;;  %v1500_v57 = vld [vmem:[%s2518_s2 + $0x38] sm:$0xf0] }
  0x2e   :  { %683 = vmatpush.bf16.msrb.mxu2 %v1900_v59  ;;  %v1474_v58 = vld [vmem:[%s2518_s2] sm:$0xf]  ;;  %v1645_v62 = vld [vmem:[%s2518_s2 + $0xc] sm:$0xf0]  ;;  %v1643_v63 = vld [vmem:[%s2518_s2 + $0x4] sm:$0xf]  ;;  %v2083_v2 = vor.u32 %v1650_v54, %v1498_v52  ;;  %v2087_v3 = vor.u32 %v1648_v56, %v1500_v57 }
  0x2f   :  { %696 = vmatpush.bf16.msrb.mxu3 %v1904_v60  ;;  %v1476_v0 = vld [vmem:[%s2518_s2 + $0x10] sm:$0xf0]  ;;  %v2089_v4 = vor.u32 %v1645_v62, %v1474_v58  ;;  %v1482_v5 = vld [vmem:[%s2518_s2 + $0x8] sm:$0xf]  ;;  %v1646_v6 = vld [vmem:[%s2518_s2 + $0x14] sm:$0xf0] }
  0x30   :  { %658 = vmatpush.bf16.msrb.mxu0 %v1906_v61  ;;  %v2098_v10 = vor.u32 %v1643_v63, %v1476_v0  ;;  %v1644_v11 = vld [vmem:[%s2518_s2 + $0xc] sm:$0xf]  ;;  %v1484_v12 = vld [vmem:[%s2518_s2 + $0x18] sm:$0xf0]  ;;  %v2107_v14 = vor.u32 %v1646_v6, %v1482_v5  ;;  %v1609_v16 = vld [vmem:[%s2516_s0 + $0x10] sm:$0xff] }
  0x31   :  { %671 = vmatpush.bf16.msrb.mxu1 %v1918_v1  ;;  %v2111_v15 = vor.u32 %v1644_v11, %v1484_v12  ;;  %v1610_v17 = vld [vmem:[%s2516_s0 + $0x18] sm:$0xff]  ;;  %v382_v24 = vld [vmem:[%s2519_s3] sm:$0xf] }
  0x32   :  { %684 = vmatpush.bf16.msrb.mxu2 %v1936_v7  ;;  %v384_v25 = vperm.slane %v382_v24, 0  ;;  %v385_v28 = vperm.slane %v382_v24, 1  ;;  %v2197_v39 = vperm.slane %v382_v24, 2  ;;  %v2199_v40 = vperm.slane %v382_v24, 3 }
  0x33   :  { %697 = vmatpush.bf16.msrb.mxu3 %v1940_v8 }
  0x34   :  { %659 = vmatpush.bf16.msrb.mxu0 %v1942_v9 }
  0x35   :  { %672 = vmatpush.bf16.msrb.mxu1 %v1954_v13 }
  0x36   :  { %685 = vmatpush.bf16.msrb.mxu2 %v1975_v20 }
  0x37   :  { %698 = vmatpush.bf16.msrb.mxu3 %v1979_v21  ;;  %279 = vmatmul.bf16.gmra.mxu0 %v1608_v19 }
  0x38   :  { %660 = vmatpush.bf16.msrb.mxu0 %v1981_v22  ;;  %308 = vmatmul.bf16.gmra.mxu1 %v1608_v19 }
  0x39   :  { %673 = vmatpush.bf16.msrb.mxu1 %v1993_v26  ;;  %337 = vmatmul.bf16.gmra.mxu2 %v1608_v19 }
  0x3a   :  { %366 = vmatmul.bf16.gmra.mxu3 %v1608_v19  ;;  %686 = vmatpush.bf16.msrb.mxu2 %v2011_v32 }
  0x3b   :  { %699 = vmatpush.bf16.msrb.mxu3 %v2015_v33 }
  0x3c   :  { %661 = vmatpush.bf16.msrb.mxu0 %v2017_v34 }
  0x3d   :  { %674 = vmatpush.bf16.msrb.mxu1 %v2026_v38 }
  0x3e   :  { %687 = vmatpush.bf16.msrb.mxu2 %v2035_v42 }
  0x3f   :  { %700 = vmatpush.bf16.msrb.mxu3 %v2048_v46 }
  0x40   :  { %662 = vmatpush.bf16.msrb.mxu0 %v2050_v50 }
  0x41   :  { %675 = vmatpush.bf16.msrb.mxu1 %v2062_v55 }
  0x42   :  { %688 = vmatpush.bf16.msrb.mxu2 %v2083_v2 }
  0x43   :  { %701 = vmatpush.bf16.msrb.mxu3 %v2087_v3 }
  0x44   :  { %663 = vmatpush.bf16.msrb.mxu0 %v2089_v4 }
  0x45   :  { %676 = vmatpush.bf16.msrb.mxu1 %v2098_v10 }
  0x46   :  { %689 = vmatpush.bf16.msrb.mxu2 %v2107_v14 }
  0x47   :  { %702 = vmatpush.bf16.msrb.mxu3 %v2111_v15  ;;  %284 = vmatmul.bf16.gmra.mxu0 %v1609_v16 }
  0x48   :  { %739 = vmatpush.bf16.msra.mxu0 %v1837_v37  ;;  %313 = vmatmul.bf16.gmra.mxu1 %v1609_v16 }
  0x49   :  { %752 = vmatpush.bf16.msra.mxu1 %v1848_v41  ;;  %342 = vmatmul.bf16.gmra.mxu2 %v1609_v16 }
  0x4a   :  { %765 = vmatpush.bf16.msra.mxu2 %v1865_v47  ;;  %371 = vmatmul.bf16.gmra.mxu3 %v1609_v16 }
  0x4b   :  { %778 = vmatpush.bf16.msra.mxu3 %v1868_v48 }
  0x4c   :  { %740 = vmatpush.bf16.msra.mxu0 %v1870_v49 }
  0x4d   :  { %753 = vmatpush.bf16.msra.mxu1 %v1882_v53 }
  0x4e   :  { %766 = vmatpush.bf16.msra.mxu2 %v1900_v59 }
  0x4f   :  { %779 = vmatpush.bf16.msra.mxu3 %v1904_v60 }
  0x50   :  { %741 = vmatpush.bf16.msra.mxu0 %v1906_v61 }
  0x51   :  { %754 = vmatpush.bf16.msra.mxu1 %v1918_v1 }
  0x52   :  { %767 = vmatpush.bf16.msra.mxu2 %v1936_v7 }
  0x53   :  { %780 = vmatpush.bf16.msra.mxu3 %v1940_v8 }
  0x54   :  { %742 = vmatpush.bf16.msra.mxu0 %v1942_v9 }
  0x55   :  { %755 = vmatpush.bf16.msra.mxu1 %v1954_v13 }
  0x56   :  { %768 = vmatpush.bf16.msra.mxu2 %v1975_v20 }
  0x57   :  { %781 = vmatpush.bf16.msra.mxu3 %v1979_v21  ;;  %289 = vmatmul.bf16.gmra.mxu0 %v1610_v17 }
  0x58   :  { %743 = vmatpush.bf16.msra.mxu0 %v1981_v22  ;;  %318 = vmatmul.bf16.gmra.mxu1 %v1610_v17 }
  0x59   :  { %756 = vmatpush.bf16.msra.mxu1 %v1993_v26  ;;  %347 = vmatmul.bf16.gmra.mxu2 %v1610_v17 }
  0x5a   :  { %769 = vmatpush.bf16.msra.mxu2 %v2011_v32  ;;  %376 = vmatmul.bf16.gmra.mxu3 %v1610_v17 }
  0x5b   :  { %782 = vmatpush.bf16.msra.mxu3 %v2015_v33 }
  0x5c   :  { %744 = vmatpush.bf16.msra.mxu0 %v2017_v34 }
  0x5d   :  { %757 = vmatpush.bf16.msra.mxu1 %v2026_v38 }
  0x5e   :  { %770 = vmatpush.bf16.msra.mxu2 %v2035_v42 }
  0x5f   :  { %783 = vmatpush.bf16.msra.mxu3 %v2048_v46 }
  0x60   :  { %745 = vmatpush.bf16.msra.mxu0 %v2050_v50 }
  0x61   :  { %758 = vmatpush.bf16.msra.mxu1 %v2062_v55 }
  0x62   :  { %771 = vmatpush.bf16.msra.mxu2 %v2083_v2 }
  0x63   :  { %784 = vmatpush.bf16.msra.mxu3 %v2087_v3 }
  0x64   :  { %746 = vmatpush.bf16.msra.mxu0 %v2089_v4 }
  0x65   :  { %759 = vmatpush.bf16.msra.mxu1 %v2098_v10 }
  0x66   :  { %772 = vmatpush.bf16.msra.mxu2 %v2107_v14 }
  0x67   :  { %785 = vmatpush.bf16.msra.mxu3 %v2111_v15  ;;  %664 = vmatmul.bf16.vlgmr.msrb.gmra.mxu0 %v1788_v18 }
  0x68   :  { %677 = vmatmul.bf16.vlgmr.msrb.gmra.mxu1 %v1788_v18  ;;  %823 = vmatpush.bf16.msrb.mxu0 %v1837_v37 }
  0x69   :  { %690 = vmatmul.bf16.vlgmr.msrb.gmra.mxu2 %v1788_v18  ;;  %836 = vmatpush.bf16.msrb.mxu1 %v1848_v41 }
  0x6a   :  { %703 = vmatmul.bf16.vlgmr.msrb.gmra.mxu3 %v1788_v18  ;;  %849 = vmatpush.bf16.msrb.mxu2 %v1865_v47 }
  0x6b   :  { %862 = vmatpush.bf16.msrb.mxu3 %v1868_v48 }
  0x6c   :  { %824 = vmatpush.bf16.msrb.mxu0 %v1870_v49 }
  0x6d   :  { %837 = vmatpush.bf16.msrb.mxu1 %v1882_v53 }
  0x6e   :  { %850 = vmatpush.bf16.msrb.mxu2 %v1900_v59 }
  0x6f   :  { %863 = vmatpush.bf16.msrb.mxu3 %v1904_v60 }
  0x70   :  { %825 = vmatpush.bf16.msrb.mxu0 %v1906_v61 }
  0x71   :  { %838 = vmatpush.bf16.msrb.mxu1 %v1918_v1 }
  0x72   :  { %851 = vmatpush.bf16.msrb.mxu2 %v1936_v7 }
  0x73   :  { %864 = vmatpush.bf16.msrb.mxu3 %v1940_v8 }
  0x74   :  { %826 = vmatpush.bf16.msrb.mxu0 %v1942_v9 }
  0x75   :  { %839 = vmatpush.bf16.msrb.mxu1 %v1954_v13 }
  0x76   :  { %852 = vmatpush.bf16.msrb.mxu2 %v1975_v20 }
  0x77   :  { %865 = vmatpush.bf16.msrb.mxu3 %v1979_v21 }
  0x78   :  { %827 = vmatpush.bf16.msrb.mxu0 %v1981_v22 }
  0x79   :  { %840 = vmatpush.bf16.msrb.mxu1 %v1993_v26 }
  0x7a   :  { %853 = vmatpush.bf16.msrb.mxu2 %v2011_v32 }
  0x7b   :  { %866 = vmatpush.bf16.msrb.mxu3 %v2015_v33 }
  0x7c   :  { %828 = vmatpush.bf16.msrb.mxu0 %v2017_v34 }
  0x7d   :  { %841 = vmatpush.bf16.msrb.mxu1 %v2026_v38 }
  0x7e   :  { %854 = vmatpush.bf16.msrb.mxu2 %v2035_v42 }
  0x7f   :  { %867 = vmatpush.bf16.msrb.mxu3 %v2048_v46 }
  0x80   :  { %829 = vmatpush.bf16.msrb.mxu0 %v2050_v50 }
  0x81   :  { %842 = vmatpush.bf16.msrb.mxu1 %v2062_v55 }
  0x82   :  { %855 = vmatpush.bf16.msrb.mxu2 %v2083_v2 }
  0x83   :  { %868 = vmatpush.bf16.msrb.mxu3 %v2087_v3 }
  0x84   :  { %830 = vmatpush.bf16.msrb.mxu0 %v2089_v4 }
  0x85   :  { %843 = vmatpush.bf16.msrb.mxu1 %v2098_v10 }
  0x86   :  { %856 = vmatpush.bf16.msrb.mxu2 %v2107_v14 }
  0x87   :  { %869 = vmatpush.bf16.msrb.mxu3 %v2111_v15 }
  0xa4   :  { %v275_v19 = vpop.f32.mrf.mxu0 }
  0xa5   :  { %v304_v23 = vpop.f32.mrf.mxu1 }
  0xac   :  { %v2189_v27 = vpop.f32.mrf.mxu2  ;;  %v277_v30 = vpop.f32.mrf.mxu0 }
  0xad   :  { %v2191_v29 = vpop.f32.mrf.mxu3  ;;  %v2193_v31 = vadd.f32 %v384_v25, %v277_v30  ;;  %v306_v35 = vpop.f32.mrf.mxu1 }
  0xae   :  { %v2195_v36 = vadd.f32 %v385_v28, %v306_v35 }
  0xb4   :  { %v335_v43 = vpop.f32.mrf.mxu2  ;;  %v280_v51 = vpop.f32.mrf.mxu0 }
  0xb5   :  { %v2202_v44 = vadd.f32 %v2197_v39, %v335_v43  ;;  %v364_v45 = vpop.f32.mrf.mxu3  ;;  %v2207_v54 = vadd.f32 %v384_v25, %v280_v51  ;;  %v309_v56 = vpop.f32.mrf.mxu1 }
  0xb6   :  { %v2205_v52 = vadd.f32 %v2199_v40, %v364_v45  ;;  %v2209_v57 = vadd.f32 %v385_v28, %v309_v56 }
  0xbc   :  { %v338_v58 = vpop.f32.mrf.mxu2  ;;  %v282_v0 = vpop.f32.mrf.mxu0 }
  0xbd   :  { %v2212_v62 = vadd.f32 %v2197_v39, %v338_v58  ;;  %v367_v63 = vpop.f32.mrf.mxu3  ;;  %v2217_v6 = vadd.f32 %v384_v25, %v282_v0  ;;  %v311_v11 = vpop.f32.mrf.mxu1 }
  0xbe   :  { %v2215_v5 = vadd.f32 %v2199_v40, %v367_v63  ;;  %v2219_v12 = vadd.f32 %v385_v28, %v311_v11 }
  0xc0   :  { %2522 = vst [vmem:[#allocation8_spill] sm:$0xff] %v2219_v12 }
  0xc4   :  { %v340_v16 = vpop.f32.mrf.mxu2  ;;  %v285_v24 = vpop.f32.mrf.mxu0 }
  0xc5   :  { %v2222_v17 = vadd.f32 %v2197_v39, %v340_v16  ;;  %v369_v18 = vpop.f32.mrf.mxu3  ;;  %v2227_v35 = vadd.f32 %v384_v25, %v285_v24  ;;  %v314_v43 = vpop.f32.mrf.mxu1 }
  0xc6   :  { %v2225_v30 = vadd.f32 %v2199_v40, %v369_v18  ;;  %v2229_v45 = vadd.f32 %v385_v28, %v314_v43 }
  0xc7   :  { %2523 = vst [vmem:[#allocation9_spill] sm:$0xff] %v2222_v17 }
  0xc8   :  { %2524 = vst [vmem:[#allocation10_spill] sm:$0xff] %v2225_v30 }
  0xc9   :  { %2525 = vst [vmem:[#allocation11_spill] sm:$0xff] %v2227_v35 }
  0xca   :  { %2526 = vst [vmem:[#allocation12_spill] sm:$0xff] %v2229_v45 }
  0xcc   :  { %v343_v51 = vpop.f32.mrf.mxu2  ;;  %v287_v63 = vpop.f32.mrf.mxu0 }
  0xcd   :  { %v2232_v56 = vadd.f32 %v2197_v39, %v343_v51  ;;  %v372_v58 = vpop.f32.mrf.mxu3  ;;  %v2237_v11 = vadd.f32 %v384_v25, %v287_v63  ;;  %v316_v16 = vpop.f32.mrf.mxu1 }
  0xce   :  { %v2235_v0 = vadd.f32 %v2199_v40, %v372_v58  ;;  %v2239_v17 = vadd.f32 %v385_v28, %v316_v16 }
  0xcf   :  { %2527 = vst [vmem:[#allocation13_spill] sm:$0xff] %v2232_v56 }
  0xd0   :  { %2528 = vst [vmem:[#allocation14_spill] sm:$0xff] %v2235_v0 }
  0xd1   :  { %2529 = vst [vmem:[#allocation15_spill] sm:$0xff] %v2237_v11 }
  0xd2   :  { %2530 = vst [vmem:[#allocation16_spill] sm:$0xff] %v2239_v17 }
  0xd4   :  { %v345_v18 = vpop.f32.mrf.mxu2  ;;  %v290_v45 = vpop.f32.mrf.mxu0 }
  0xd5   :  { %v2242_v24 = vadd.f32 %v2197_v39, %v345_v18  ;;  %v374_v43 = vpop.f32.mrf.mxu3  ;;  %v2247_v51 = vadd.f32 %v384_v25, %v290_v45  ;;  %v319_v56 = vpop.f32.mrf.mxu1 }
  0xd6   :  { %v2245_v35 = vadd.f32 %v2199_v40, %v374_v43  ;;  %v2249_v30 = vadd.f32 %v385_v28, %v319_v56  ;;  %v392_v43 = vadd.f32 %v384_v25, %v275_v19  ;;  %v395_v19 = vadd.f32 %v2199_v40, %v2191_v29 }
  0xd7   :  { %2531 = vst [vmem:[#allocation17_spill] sm:$0xff] %v2242_v24 }
  0xd8   :  { %2532 = vst [vmem:[#allocation18_spill] sm:$0xff] %v2245_v35 }
  0xd9   :  { %2533 = vst [vmem:[#allocation19_spill] sm:$0xff] %v2247_v51  ;;  %v393_v51 = vadd.f32 %v385_v28, %v304_v23 }
  0xda   :  { %2534 = vst [vmem:[#allocation20_spill] sm:$0xff] %v2249_v30 }
  0xdc   :  { %v348_v58 = vpop.f32.mrf.mxu2  ;;  %v292_v17 = vpop.f32.mrf.mxu0 }
  0xdd   :  { %v2252_v63 = vadd.f32 %v2197_v39, %v348_v58  ;;  %v377_v16 = vpop.f32.mrf.mxu3  ;;  %v2257_v18 = vadd.f32 %v384_v25, %v292_v17  ;;  %v321_v24 = vpop.f32.mrf.mxu1 }
  0xde   :  { %v2255_v11 = vadd.f32 %v2199_v40, %v377_v16  ;;  %v2259_v0 = vadd.f32 %v385_v28, %v321_v24  ;;  %v394_v24 = vadd.f32 %v2197_v39, %v2189_v27 }
  0xdf   :  { %2535 = vst [vmem:[#allocation21_spill] sm:$0xff] %v2252_v63 }
  0xe0   :  { %2536 = vst [vmem:[#allocation22_spill] sm:$0xff] %v2255_v11 }
  0xe4   :  { %v350_v45 = vpop.f32.mrf.mxu2  ;;  %v665_v35 = vpop.f32.mrf.mxu0 }
  0xe5   :  { %v2262_v56 = vadd.f32 %v2197_v39, %v350_v45  ;;  %v379_v30 = vpop.f32.mrf.mxu3  ;;  %v708_v63 = vadd.f32 %v665_v35, %v392_v43  ;;  %v678_v12 = vpop.f32.mrf.mxu1 }
  0xe6   :  { %v2265_v58 = vadd.f32 %v2199_v40, %v379_v30  ;;  %v709_v16 = vadd.f32 %v678_v12, %v393_v51 }
  0xe7   :  { %2537 = vst [vmem:[#allocation23_spill] sm:$0xff] %v2262_v56  ;;  %v712_v11 = vmul.f32 0.5, %v708_v63 }
  0xe8   :  { %2538 = vst [vmem:[#allocation24_spill] sm:$0xff] %v2265_v58  ;;  %v716_v17 = vmul.f32 0.5, %v709_v16 }
  0xe9   :  { %1679 = vtanh.f32 %v712_v11 }
  0xea   :  { %1681 = vtanh.f32 %v716_v17 }
  0xec   :  { %v691_v23 = vpop.f32.mrf.mxu2  ;;  %v667_v45 = vpop.f32.mrf.mxu0 }
  0xed   :  { %v710_v25 = vadd.f32 %v691_v23, %v394_v24  ;;  %v704_v28 = vpop.f32.mrf.mxu3  ;;  %v680_v30 = vpop.f32.mrf.mxu1 }
  0xee   :  { %v711_v56 = vadd.f32 %v704_v28, %v395_v19 }
  0xef   :  { %1683 = vtanh.f32 %v710_v25  ;;  %v1680_v35 = vpop.eup %1679 }
  0xf0   :  { %v721_v43 = vmul.f32 0.5, %v711_v56  ;;  %v1682_v12 = vpop.eup %1681  ;;  %v714_v51 = vadd.f32 1.0, %v1680_v35  ;;  %v2277_v56 = vld [vmem:[%s2520_s4] sm:$0xff] }
  0xf1   :  { %v718_v63 = vadd.f32 1.0, %v1682_v12 }
  0xf2   :  { %1685 = vtanh.f32 %v721_v43  ;;  %v715_v11 = vmul.f32 0.5, %v714_v51 }
  0xf3   :  { %v719_v16 = vmul.f32 0.5, %v718_v63 }
  0xf4   :  { %v693_v27 = vpop.f32.mrf.mxu2 }
  0xf5   :  { %v1684_v39 = vpop.eup %1683  ;;  %v706_v17 = vpop.f32.mrf.mxu3  ;;  %v725_v58 = vmul.f32 0.0, %v719_v16 }
  0xf6   :  { %v726_v29 = vmul.f32 %v1684_v39, %v715_v11 }
  0xf8   :  { %v1686_v40 = vpop.eup %1685  ;;  %v2271_v24 = vadd.f32 %v726_v29, %v725_v58 }
  0xf9   :  { %v723_v19 = vadd.f32 1.0, %v1686_v40 }
  0xfa   :  { %1687 = vtanh.f32 %v2271_v24 }
  0xfb   :  { %v724_v23 = vmul.f32 0.5, %v723_v19 }
 0x100   :  { %v1688_v25 = vpop.eup %1687 }
 0x101   :  { %v729_v28 = vmul.f32 %v1688_v25, %v724_v23 }
 0x103   :  { %v730_v45 = vmul.f32 %v729_v28, %v2277_v56  ;;  %v738_v30 = vpack.c.bf16 %v729_v28, %v729_v28 }
 0x105   :  { %v731_v35 = vpack.c.bf16 %v730_v45, %v730_v45  ;;  %747 = vmatmul.bf16.vlgmr.msra.gmra.mxu0 %v738_v30  ;;  %760 = vmatmul.bf16.vlgmr.msra.gmra.mxu1 %v738_v30 }
 0x106   :  { %773 = vmatmul.bf16.vlgmr.msra.gmra.mxu2 %v738_v30  ;;  %786 = vmatmul.bf16.vlgmr.msra.gmra.mxu3 %v738_v30 }
 0x107   :  { %732 = vst [vmem:[%s2521_s5] sm:$0xf] %v731_v35  ;;  %907 = vmatpush.bf16.msra.mxu0 %v1837_v37  ;;  %920 = vmatpush.bf16.msra.mxu1 %v1848_v41 }
 0x108   :  { %933 = vmatpush.bf16.msra.mxu2 %v1865_v47  ;;  %946 = vmatpush.bf16.msra.mxu3 %v1868_v48 }
 0x10b   :  { %908 = vmatpush.bf16.msra.mxu0 %v1870_v49  ;;  %921 = vmatpush.bf16.msra.mxu1 %v1882_v53 }
 0x10c   :  { %934 = vmatpush.bf16.msra.mxu2 %v1900_v59  ;;  %947 = vmatpush.bf16.msra.mxu3 %v1904_v60 }
 0x10f   :  { %909 = vmatpush.bf16.msra.mxu0 %v1906_v61  ;;  %922 = vmatpush.bf16.msra.mxu1 %v1918_v1 }
 0x110   :  { %935 = vmatpush.bf16.msra.mxu2 %v1936_v7  ;;  %948 = vmatpush.bf16.msra.mxu3 %v1940_v8 }
 0x113   :  { %910 = vmatpush.bf16.msra.mxu0 %v1942_v9  ;;  %923 = vmatpush.bf16.msra.mxu1 %v1954_v13 }
 0x114   :  { %936 = vmatpush.bf16.msra.mxu2 %v1975_v20  ;;  %949 = vmatpush.bf16.msra.mxu3 %v1979_v21 }
 0x117   :  { %911 = vmatpush.bf16.msra.mxu0 %v1981_v22  ;;  %924 = vmatpush.bf16.msra.mxu1 %v1993_v26 }
 0x118   :  { %937 = vmatpush.bf16.msra.mxu2 %v2011_v32  ;;  %950 = vmatpush.bf16.msra.mxu3 %v2015_v33 }
 0x11b   :  { %912 = vmatpush.bf16.msra.mxu0 %v2017_v34  ;;  %925 = vmatpush.bf16.msra.mxu1 %v2026_v38 }
 0x11c   :  { %938 = vmatpush.bf16.msra.mxu2 %v2035_v42  ;;  %951 = vmatpush.bf16.msra.mxu3 %v2048_v46 }
 0x11f   :  { %913 = vmatpush.bf16.msra.mxu0 %v2050_v50  ;;  %926 = vmatpush.bf16.msra.mxu1 %v2062_v55 }
 0x120   :  { %939 = vmatpush.bf16.msra.mxu2 %v2083_v2  ;;  %952 = vmatpush.bf16.msra.mxu3 %v2087_v3 }
 0x123   :  { %914 = vmatpush.bf16.msra.mxu0 %v2089_v4  ;;  %927 = vmatpush.bf16.msra.mxu1 %v2098_v10 }
 0x124   :  { %940 = vmatpush.bf16.msra.mxu2 %v2107_v14  ;;  %953 = vmatpush.bf16.msra.mxu3 %v2111_v15 }
 0x182   :  { %v748_v58 = vpop.f32.mrf.mxu0  ;;  %v761_v43 = vpop.f32.mrf.mxu1 }
 0x183   :  { %v791_v12 = vadd.f32 %v748_v58, %v2193_v31  ;;  %v792_v51 = vadd.f32 %v761_v43, %v2195_v36 }
 0x185   :  { %v795_v63 = vmul.f32 0.5, %v791_v12  ;;  %v799_v11 = vmul.f32 0.5, %v792_v51 }
 0x187   :  { %1689 = vtanh.f32 %v795_v63 }
 0x188   :  { %1691 = vtanh.f32 %v799_v11 }
 0x189   :  { %v774_v16 = vpop.f32.mrf.mxu2  ;;  %v787_v27 = vpop.f32.mrf.mxu3 }
 0x18a   :  { %v793_v39 = vadd.f32 %v774_v16, %v2202_v44  ;;  %v794_v17 = vadd.f32 %v787_v27, %v2205_v52  ;;  %v750_v29 = vpop.f32.mrf.mxu0  ;;  %v763_v40 = vpop.f32.mrf.mxu1 }
 0x18c   :  { %1693 = vtanh.f32 %v793_v39  ;;  %v804_v19 = vmul.f32 0.5, %v794_v17 }
 0x18d   :  { %v1690_v23 = vpop.eup %1689 }
 0x18e   :  { %v1692_v25 = vpop.eup %1691  ;;  %v797_v28 = vadd.f32 1.0, %v1690_v23  ;;  %1695 = vtanh.f32 %v804_v19 }
 0x18f   :  { %v801_v31 = vadd.f32 1.0, %v1692_v25 }
 0x190   :  { %v798_v36 = vmul.f32 0.5, %v797_v28 }
 0x191   :  { %v802_v45 = vmul.f32 0.5, %v801_v31  ;;  %v776_v30 = vpop.f32.mrf.mxu2  ;;  %v789_v35 = vpop.f32.mrf.mxu3 }
 0x192   :  { %v1694_v58 = vpop.eup %1693 }
 0x193   :  { %v808_v43 = vmul.f32 %v802_v45, %v2271_v24  ;;  %v809_v12 = vmul.f32 %v1694_v58, %v798_v36 }
 0x194   :  { %v1696_v44 = vpop.eup %1695 }
 0x195   :  { %v2320_v51 = vadd.f32 %v809_v12, %v808_v43  ;;  %v806_v52 = vadd.f32 1.0, %v1696_v44 }
 0x197   :  { %1697 = vtanh.f32 %v2320_v51  ;;  %v807_v63 = vmul.f32 0.5, %v806_v52 }
 0x19d   :  { %v1698_v11 = vpop.eup %1697 }
 0x19e   :  { %v812_v16 = vmul.f32 %v1698_v11, %v807_v63 }
 0x1a0   :  { %v813_v27 = vmul.f32 %v812_v16, %v2277_v56  ;;  %v822_v39 = vpack.c.bf16 %v812_v16, %v812_v16 }
 0x1a2   :  { %v814_v17 = vpack.c.bf16 %v813_v27, %v813_v27  ;;  %831 = vmatmul.bf16.vlgmr.msrb.gmra.mxu0 %v822_v39  ;;  %844 = vmatmul.bf16.vlgmr.msrb.gmra.mxu1 %v822_v39 }
 0x1a3   :  { %857 = vmatmul.bf16.vlgmr.msrb.gmra.mxu2 %v822_v39  ;;  %870 = vmatmul.bf16.vlgmr.msrb.gmra.mxu3 %v822_v39 }
 0x1a4   :  { %1600 = vst [vmem:[%s2521_s5 + $0x4] sm:$0xf] %v814_v17  ;;  %991 = vmatpush.bf16.msrb.mxu0 %v1837_v37  ;;  %1004 = vmatpush.bf16.msrb.mxu1 %v1848_v41 }
 0x1a5   :  { %1017 = vmatpush.bf16.msrb.mxu2 %v1865_v47  ;;  %1030 = vmatpush.bf16.msrb.mxu3 %v1868_v48 }
 0x1a8   :  { %992 = vmatpush.bf16.msrb.mxu0 %v1870_v49  ;;  %1005 = vmatpush.bf16.msrb.mxu1 %v1882_v53 }
 0x1a9   :  { %1018 = vmatpush.bf16.msrb.mxu2 %v1900_v59  ;;  %1031 = vmatpush.bf16.msrb.mxu3 %v1904_v60 }
 0x1ac   :  { %993 = vmatpush.bf16.msrb.mxu0 %v1906_v61  ;;  %1006 = vmatpush.bf16.msrb.mxu1 %v1918_v1 }
 0x1ad   :  { %1019 = vmatpush.bf16.msrb.mxu2 %v1936_v7  ;;  %1032 = vmatpush.bf16.msrb.mxu3 %v1940_v8 }
 0x1b0   :  { %994 = vmatpush.bf16.msrb.mxu0 %v1942_v9  ;;  %1007 = vmatpush.bf16.msrb.mxu1 %v1954_v13 }
 0x1b1   :  { %1020 = vmatpush.bf16.msrb.mxu2 %v1975_v20  ;;  %1033 = vmatpush.bf16.msrb.mxu3 %v1979_v21 }
 0x1b4   :  { %995 = vmatpush.bf16.msrb.mxu0 %v1981_v22  ;;  %1008 = vmatpush.bf16.msrb.mxu1 %v1993_v26 }
 0x1b5   :  { %1021 = vmatpush.bf16.msrb.mxu2 %v2011_v32  ;;  %1034 = vmatpush.bf16.msrb.mxu3 %v2015_v33 }
 0x1b8   :  { %996 = vmatpush.bf16.msrb.mxu0 %v2017_v34  ;;  %1009 = vmatpush.bf16.msrb.mxu1 %v2026_v38 }
 0x1b9   :  { %1022 = vmatpush.bf16.msrb.mxu2 %v2035_v42  ;;  %1035 = vmatpush.bf16.msrb.mxu3 %v2048_v46 }
 0x1bc   :  { %997 = vmatpush.bf16.msrb.mxu0 %v2050_v50  ;;  %1010 = vmatpush.bf16.msrb.mxu1 %v2062_v55 }
 0x1bd   :  { %1023 = vmatpush.bf16.msrb.mxu2 %v2083_v2  ;;  %1036 = vmatpush.bf16.msrb.mxu3 %v2087_v3 }
 0x1c0   :  { %998 = vmatpush.bf16.msrb.mxu0 %v2089_v4  ;;  %1011 = vmatpush.bf16.msrb.mxu1 %v2098_v10 }
 0x1c1   :  { %1024 = vmatpush.bf16.msrb.mxu2 %v2107_v14  ;;  %1037 = vmatpush.bf16.msrb.mxu3 %v2111_v15 }
 0x21f   :  { %v832_v24 = vpop.f32.mrf.mxu0  ;;  %v845_v29 = vpop.f32.mrf.mxu1 }
 0x220   :  { %v875_v40 = vadd.f32 %v832_v24, %v2207_v54  ;;  %v876_v19 = vadd.f32 %v845_v29, %v2209_v57 }
 0x222   :  { %v879_v23 = vmul.f32 0.5, %v875_v40  ;;  %v883_v25 = vmul.f32 0.5, %v876_v19 }
 0x224   :  { %1699 = vtanh.f32 %v879_v23 }
 0x225   :  { %1701 = vtanh.f32 %v883_v25 }
 0x226   :  { %v858_v28 = vpop.f32.mrf.mxu2  ;;  %v871_v31 = vpop.f32.mrf.mxu3 }
 0x227   :  { %v877_v36 = vadd.f32 %v858_v28, %v2212_v62  ;;  %v878_v45 = vadd.f32 %v871_v31, %v2215_v5  ;;  %v834_v30 = vpop.f32.mrf.mxu0  ;;  %v847_v35 = vpop.f32.mrf.mxu1 }
 0x229   :  { %1703 = vtanh.f32 %v877_v36  ;;  %v888_v58 = vmul.f32 0.5, %v878_v45  ;;  %v2539_v36 = vld [vmem:[#allocation8_spill] sm:$0xff] }
 0x22a   :  { %v1700_v43 = vpop.eup %1699 }
 0x22b   :  { %v1702_v12 = vpop.eup %1701  ;;  %v881_v44 = vadd.f32 1.0, %v1700_v43  ;;  %1705 = vtanh.f32 %v888_v58 }
 0x22c   :  { %v885_v54 = vadd.f32 1.0, %v1702_v12  ;;  %v2540_v12 = vld [vmem:[#allocation9_spill] sm:$0xff] }
 0x22d   :  { %v882_v57 = vmul.f32 0.5, %v881_v44 }
 0x22e   :  { %v886_v52 = vmul.f32 0.5, %v885_v54  ;;  %v860_v63 = vpop.f32.mrf.mxu2  ;;  %v873_v11 = vpop.f32.mrf.mxu3  ;;  %v2541_v54 = vld [vmem:[#allocation10_spill] sm:$0xff] }
 0x22f   :  { %v1704_v16 = vpop.eup %1703 }
 0x230   :  { %v892_v27 = vmul.f32 %v886_v52, %v2320_v51  ;;  %v893_v39 = vmul.f32 %v1704_v16, %v882_v57 }
 0x231   :  { %v1706_v62 = vpop.eup %1705 }
 0x232   :  { %v2364_v17 = vadd.f32 %v893_v39, %v892_v27  ;;  %v890_v5 = vadd.f32 1.0, %v1706_v62 }
 0x234   :  { %1707 = vtanh.f32 %v2364_v17  ;;  %v891_v24 = vmul.f32 0.5, %v890_v5 }
 0x23a   :  { %v1708_v29 = vpop.eup %1707 }
 0x23b   :  { %v896_v40 = vmul.f32 %v1708_v29, %v891_v24 }
 0x23d   :  { %v897_v19 = vmul.f32 %v896_v40, %v2277_v56  ;;  %v906_v23 = vpack.c.bf16 %v896_v40, %v896_v40 }
 0x23f   :  { %v898_v25 = vpack.c.bf16 %v897_v19, %v897_v19  ;;  %915 = vmatmul.bf16.vlgmr.msra.gmra.mxu0 %v906_v23  ;;  %928 = vmatmul.bf16.vlgmr.msra.gmra.mxu1 %v906_v23 }
 0x240   :  { %941 = vmatmul.bf16.vlgmr.msra.gmra.mxu2 %v906_v23  ;;  %954 = vmatmul.bf16.vlgmr.msra.gmra.mxu3 %v906_v23 }
 0x241   :  { %1601 = vst [vmem:[%s2521_s5 + $0x8] sm:$0xf] %v898_v25  ;;  %1075 = vmatpush.bf16.msra.mxu0 %v1837_v37  ;;  %1088 = vmatpush.bf16.msra.mxu1 %v1848_v41 }
 0x242   :  { %1101 = vmatpush.bf16.msra.mxu2 %v1865_v47  ;;  %1114 = vmatpush.bf16.msra.mxu3 %v1868_v48 }
 0x245   :  { %1076 = vmatpush.bf16.msra.mxu0 %v1870_v49  ;;  %1089 = vmatpush.bf16.msra.mxu1 %v1882_v53 }
 0x246   :  { %1102 = vmatpush.bf16.msra.mxu2 %v1900_v59  ;;  %1115 = vmatpush.bf16.msra.mxu3 %v1904_v60 }
 0x249   :  { %1077 = vmatpush.bf16.msra.mxu0 %v1906_v61  ;;  %1090 = vmatpush.bf16.msra.mxu1 %v1918_v1 }
 0x24a   :  { %1103 = vmatpush.bf16.msra.mxu2 %v1936_v7  ;;  %1116 = vmatpush.bf16.msra.mxu3 %v1940_v8 }
 0x24d   :  { %1078 = vmatpush.bf16.msra.mxu0 %v1942_v9  ;;  %1091 = vmatpush.bf16.msra.mxu1 %v1954_v13 }
 0x24e   :  { %1104 = vmatpush.bf16.msra.mxu2 %v1975_v20  ;;  %1117 = vmatpush.bf16.msra.mxu3 %v1979_v21 }
 0x251   :  { %1079 = vmatpush.bf16.msra.mxu0 %v1981_v22  ;;  %1092 = vmatpush.bf16.msra.mxu1 %v1993_v26 }
 0x252   :  { %1105 = vmatpush.bf16.msra.mxu2 %v2011_v32  ;;  %1118 = vmatpush.bf16.msra.mxu3 %v2015_v33 }
 0x255   :  { %1080 = vmatpush.bf16.msra.mxu0 %v2017_v34  ;;  %1093 = vmatpush.bf16.msra.mxu1 %v2026_v38 }
 0x256   :  { %1106 = vmatpush.bf16.msra.mxu2 %v2035_v42  ;;  %1119 = vmatpush.bf16.msra.mxu3 %v2048_v46 }
 0x259   :  { %1081 = vmatpush.bf16.msra.mxu0 %v2050_v50  ;;  %1094 = vmatpush.bf16.msra.mxu1 %v2062_v55 }
 0x25a   :  { %1107 = vmatpush.bf16.msra.mxu2 %v2083_v2  ;;  %1120 = vmatpush.bf16.msra.mxu3 %v2087_v3 }
 0x25d   :  { %1082 = vmatpush.bf16.msra.mxu0 %v2089_v4  ;;  %1095 = vmatpush.bf16.msra.mxu1 %v2098_v10 }
 0x25e   :  { %1108 = vmatpush.bf16.msra.mxu2 %v2107_v14  ;;  %1121 = vmatpush.bf16.msra.mxu3 %v2111_v15 }
 0x2bc   :  { %v916_v51 = vpop.f32.mrf.mxu0  ;;  %v929_v28 = vpop.f32.mrf.mxu1 }
 0x2bd   :  { %v959_v31 = vadd.f32 %v916_v51, %v2217_v6  ;;  %v960_v45 = vadd.f32 %v929_v28, %v2539_v36 }
 0x2bf   :  { %v963_v30 = vmul.f32 0.5, %v959_v31  ;;  %v967_v35 = vmul.f32 0.5, %v960_v45 }
 0x2c1   :  { %1709 = vtanh.f32 %v963_v30 }
 0x2c2   :  { %1711 = vtanh.f32 %v967_v35 }
 0x2c3   :  { %v942_v58 = vpop.f32.mrf.mxu2  ;;  %v955_v43 = vpop.f32.mrf.mxu3 }
 0x2c4   :  { %v961_v44 = vadd.f32 %v942_v58, %v2540_v12  ;;  %v962_v57 = vadd.f32 %v955_v43, %v2541_v54  ;;  %v918_v52 = vpop.f32.mrf.mxu0  ;;  %v931_v63 = vpop.f32.mrf.mxu1  ;;  %v2542_v12 = vld [vmem:[#allocation11_spill] sm:$0xff]  ;;  %v2543_v54 = vld [vmem:[#allocation12_spill] sm:$0xff] }
 0x2c6   :  { %1713 = vtanh.f32 %v961_v44  ;;  %v972_v11 = vmul.f32 0.5, %v962_v57 }
 0x2c7   :  { %v1710_v16 = vpop.eup %1709 }
 0x2c8   :  { %v1712_v27 = vpop.eup %1711  ;;  %v965_v39 = vadd.f32 1.0, %v1710_v16  ;;  %1715 = vtanh.f32 %v972_v11 }
 0x2c9   :  { %v969_v6 = vadd.f32 1.0, %v1712_v27  ;;  %v2544_v27 = vld [vmem:[#allocation13_spill] sm:$0xff] }
 0x2ca   :  { %v966_v62 = vmul.f32 0.5, %v965_v39 }
 0x2cb   :  { %v970_v5 = vmul.f32 0.5, %v969_v6  ;;  %v944_v24 = vpop.f32.mrf.mxu2  ;;  %v957_v29 = vpop.f32.mrf.mxu3  ;;  %v2545_v6 = vld [vmem:[#allocation14_spill] sm:$0xff] }
 0x2cc   :  { %v1714_v40 = vpop.eup %1713 }
 0x2cd   :  { %v976_v19 = vmul.f32 %v970_v5, %v2364_v17  ;;  %v977_v23 = vmul.f32 %v1714_v40, %v966_v62 }
 0x2ce   :  { %v1716_v25 = vpop.eup %1715 }
 0x2cf   :  { %v2408_v51 = vadd.f32 %v977_v23, %v976_v19  ;;  %v974_v28 = vadd.f32 1.0, %v1716_v25 }
 0x2d1   :  { %1717 = vtanh.f32 %v2408_v51  ;;  %v975_v31 = vmul.f32 0.5, %v974_v28 }
 0x2d7   :  { %v1718_v36 = vpop.eup %1717 }
 0x2d8   :  { %v980_v45 = vmul.f32 %v1718_v36, %v975_v31 }
 0x2da   :  { %v981_v30 = vmul.f32 %v980_v45, %v2277_v56  ;;  %v990_v35 = vpack.c.bf16 %v980_v45, %v980_v45 }
 0x2dc   :  { %v982_v58 = vpack.c.bf16 %v981_v30, %v981_v30  ;;  %999 = vmatmul.bf16.vlgmr.msrb.gmra.mxu0 %v990_v35  ;;  %1012 = vmatmul.bf16.vlgmr.msrb.gmra.mxu1 %v990_v35 }
 0x2dd   :  { %1025 = vmatmul.bf16.vlgmr.msrb.gmra.mxu2 %v990_v35  ;;  %1038 = vmatmul.bf16.vlgmr.msrb.gmra.mxu3 %v990_v35 }
 0x2de   :  { %1602 = vst [vmem:[%s2521_s5 + $0xc] sm:$0xf] %v982_v58  ;;  %1159 = vmatpush.bf16.msrb.mxu0 %v1837_v37  ;;  %1172 = vmatpush.bf16.msrb.mxu1 %v1848_v41 }
 0x2df   :  { %1185 = vmatpush.bf16.msrb.mxu2 %v1865_v47  ;;  %1198 = vmatpush.bf16.msrb.mxu3 %v1868_v48 }
 0x2e2   :  { %1160 = vmatpush.bf16.msrb.mxu0 %v1870_v49  ;;  %1173 = vmatpush.bf16.msrb.mxu1 %v1882_v53 }
 0x2e3   :  { %1186 = vmatpush.bf16.msrb.mxu2 %v1900_v59  ;;  %1199 = vmatpush.bf16.msrb.mxu3 %v1904_v60 }
 0x2e6   :  { %1161 = vmatpush.bf16.msrb.mxu0 %v1906_v61  ;;  %1174 = vmatpush.bf16.msrb.mxu1 %v1918_v1 }
 0x2e7   :  { %1187 = vmatpush.bf16.msrb.mxu2 %v1936_v7  ;;  %1200 = vmatpush.bf16.msrb.mxu3 %v1940_v8 }
 0x2ea   :  { %1162 = vmatpush.bf16.msrb.mxu0 %v1942_v9  ;;  %1175 = vmatpush.bf16.msrb.mxu1 %v1954_v13 }
 0x2eb   :  { %1188 = vmatpush.bf16.msrb.mxu2 %v1975_v20  ;;  %1201 = vmatpush.bf16.msrb.mxu3 %v1979_v21 }
 0x2ee   :  { %1163 = vmatpush.bf16.msrb.mxu0 %v1981_v22  ;;  %1176 = vmatpush.bf16.msrb.mxu1 %v1993_v26 }
 0x2ef   :  { %1189 = vmatpush.bf16.msrb.mxu2 %v2011_v32  ;;  %1202 = vmatpush.bf16.msrb.mxu3 %v2015_v33 }
 0x2f2   :  { %1164 = vmatpush.bf16.msrb.mxu0 %v2017_v34  ;;  %1177 = vmatpush.bf16.msrb.mxu1 %v2026_v38 }
 0x2f3   :  { %1190 = vmatpush.bf16.msrb.mxu2 %v2035_v42  ;;  %1203 = vmatpush.bf16.msrb.mxu3 %v2048_v46 }
 0x2f6   :  { %1165 = vmatpush.bf16.msrb.mxu0 %v2050_v50  ;;  %1178 = vmatpush.bf16.msrb.mxu1 %v2062_v55 }
 0x2f7   :  { %1191 = vmatpush.bf16.msrb.mxu2 %v2083_v2  ;;  %1204 = vmatpush.bf16.msrb.mxu3 %v2087_v3 }
 0x2fa   :  { %1166 = vmatpush.bf16.msrb.mxu0 %v2089_v4  ;;  %1179 = vmatpush.bf16.msrb.mxu1 %v2098_v10 }
 0x2fb   :  { %1192 = vmatpush.bf16.msrb.mxu2 %v2107_v14  ;;  %1205 = vmatpush.bf16.msrb.mxu3 %v2111_v15 }
 0x359   :  { %v1000_v17 = vpop.f32.mrf.mxu0  ;;  %v1013_v43 = vpop.f32.mrf.mxu1 }
 0x35a   :  { %v1043_v44 = vadd.f32 %v1000_v17, %v2542_v12  ;;  %v1044_v57 = vadd.f32 %v1013_v43, %v2543_v54 }
 0x35c   :  { %v1047_v52 = vmul.f32 0.5, %v1043_v44  ;;  %v1051_v63 = vmul.f32 0.5, %v1044_v57 }
 0x35e   :  { %1719 = vtanh.f32 %v1047_v52 }
 0x35f   :  { %1721 = vtanh.f32 %v1051_v63 }
 0x360   :  { %v1026_v11 = vpop.f32.mrf.mxu2  ;;  %v1039_v16 = vpop.f32.mrf.mxu3 }
 0x361   :  { %v1045_v39 = vadd.f32 %v1026_v11, %v2544_v27  ;;  %v1046_v62 = vadd.f32 %v1039_v16, %v2545_v6  ;;  %v1002_v5 = vpop.f32.mrf.mxu0  ;;  %v1015_v24 = vpop.f32.mrf.mxu1 }
 0x362   :  { %v2550_v24 = vld [vmem:[#allocation19_spill] sm:$0xff] }
 0x363   :  { %1723 = vtanh.f32 %v1045_v39  ;;  %v1056_v29 = vmul.f32 0.5, %v1046_v62 }
 0x364   :  { %v1720_v40 = vpop.eup %1719 }
 0x365   :  { %v1722_v19 = vpop.eup %1721  ;;  %v1049_v23 = vadd.f32 1.0, %v1720_v40  ;;  %1725 = vtanh.f32 %v1056_v29  ;;  %v2551_v40 = vld [vmem:[#allocation20_spill] sm:$0xff] }
 0x366   :  { %v1053_v25 = vadd.f32 1.0, %v1722_v19 }
 0x367   :  { %v1050_v28 = vmul.f32 0.5, %v1049_v23 }
 0x368   :  { %v1054_v31 = vmul.f32 0.5, %v1053_v25  ;;  %v1028_v36 = vpop.f32.mrf.mxu2  ;;  %v1041_v45 = vpop.f32.mrf.mxu3 }
 0x369   :  { %v1724_v30 = vpop.eup %1723  ;;  %v2552_v36 = vld [vmem:[#allocation21_spill] sm:$0xff] }
 0x36a   :  { %v1060_v35 = vmul.f32 %v1054_v31, %v2408_v51  ;;  %v1061_v58 = vmul.f32 %v1724_v30, %v1050_v28  ;;  %v2553_v30 = vld [vmem:[#allocation22_spill] sm:$0xff] }
 0x36b   :  { %v1726_v17 = vpop.eup %1725 }
 0x36c   :  { %v2452_v43 = vadd.f32 %v1061_v58, %v1060_v35  ;;  %v1058_v12 = vadd.f32 1.0, %v1726_v17 }
 0x36e   :  { %1727 = vtanh.f32 %v2452_v43  ;;  %v1059_v44 = vmul.f32 0.5, %v1058_v12 }
 0x374   :  { %v1728_v54 = vpop.eup %1727 }
 0x375   :  { %v1064_v57 = vmul.f32 %v1728_v54, %v1059_v44 }
 0x377   :  { %v1065_v52 = vmul.f32 %v1064_v57, %v2277_v56  ;;  %v1074_v63 = vpack.c.bf16 %v1064_v57, %v1064_v57 }
 0x379   :  { %v1066_v11 = vpack.c.bf16 %v1065_v52, %v1065_v52  ;;  %1083 = vmatmul.bf16.vlgmr.msra.gmra.mxu0 %v1074_v63  ;;  %1096 = vmatmul.bf16.vlgmr.msra.gmra.mxu1 %v1074_v63 }
 0x37a   :  { %1109 = vmatmul.bf16.vlgmr.msra.gmra.mxu2 %v1074_v63  ;;  %1122 = vmatmul.bf16.vlgmr.msra.gmra.mxu3 %v1074_v63 }
 0x37b   :  { %1603 = vst [vmem:[%s2521_s5 + $0x10] sm:$0xf] %v1066_v11  ;;  %1243 = vmatpush.bf16.msra.mxu0 %v1837_v37  ;;  %1256 = vmatpush.bf16.msra.mxu1 %v1848_v41 }
 0x37c   :  { %1269 = vmatpush.bf16.msra.mxu2 %v1865_v47  ;;  %1282 = vmatpush.bf16.msra.mxu3 %v1868_v48  ;;  %v2546_v47 = vld [vmem:[#allocation15_spill] sm:$0xff] }
 0x37f   :  { %1244 = vmatpush.bf16.msra.mxu0 %v1870_v49  ;;  %1257 = vmatpush.bf16.msra.mxu1 %v1882_v53  ;;  %v2547_v49 = vld [vmem:[#allocation16_spill] sm:$0xff] }
 0x380   :  { %1270 = vmatpush.bf16.msra.mxu2 %v1900_v59  ;;  %1283 = vmatpush.bf16.msra.mxu3 %v1904_v60 }
 0x383   :  { %1245 = vmatpush.bf16.msra.mxu0 %v1906_v61  ;;  %1258 = vmatpush.bf16.msra.mxu1 %v1918_v1 }
 0x384   :  { %1271 = vmatpush.bf16.msra.mxu2 %v1936_v7  ;;  %1284 = vmatpush.bf16.msra.mxu3 %v1940_v8  ;;  %v2548_v7 = vld [vmem:[#allocation17_spill] sm:$0xff] }
 0x387   :  { %1246 = vmatpush.bf16.msra.mxu0 %v1942_v9  ;;  %1259 = vmatpush.bf16.msra.mxu1 %v1954_v13  ;;  %v2549_v9 = vld [vmem:[#allocation18_spill] sm:$0xff] }
 0x388   :  { %1272 = vmatpush.bf16.msra.mxu2 %v1975_v20  ;;  %1285 = vmatpush.bf16.msra.mxu3 %v1979_v21 }
 0x38b   :  { %1247 = vmatpush.bf16.msra.mxu0 %v1981_v22  ;;  %1260 = vmatpush.bf16.msra.mxu1 %v1993_v26 }
 0x38c   :  { %1273 = vmatpush.bf16.msra.mxu2 %v2011_v32  ;;  %1286 = vmatpush.bf16.msra.mxu3 %v2015_v33 }
 0x38f   :  { %1248 = vmatpush.bf16.msra.mxu0 %v2017_v34  ;;  %1261 = vmatpush.bf16.msra.mxu1 %v2026_v38 }
 0x390   :  { %1274 = vmatpush.bf16.msra.mxu2 %v2035_v42  ;;  %1287 = vmatpush.bf16.msra.mxu3 %v2048_v46 }
 0x393   :  { %1249 = vmatpush.bf16.msra.mxu0 %v2050_v50  ;;  %1262 = vmatpush.bf16.msra.mxu1 %v2062_v55 }
 0x394   :  { %1275 = vmatpush.bf16.msra.mxu2 %v2083_v2  ;;  %1288 = vmatpush.bf16.msra.mxu3 %v2087_v3 }
 0x397   :  { %1250 = vmatpush.bf16.msra.mxu0 %v2089_v4  ;;  %1263 = vmatpush.bf16.msra.mxu1 %v2098_v10 }
 0x398   :  { %1276 = vmatpush.bf16.msra.mxu2 %v2107_v14  ;;  %1289 = vmatpush.bf16.msra.mxu3 %v2111_v15 }
 0x3f6   :  { %v1084_v37 = vpop.f32.mrf.mxu0  ;;  %v1097_v41 = vpop.f32.mrf.mxu1 }
 0x3f7   :  { %v1127_v48 = vadd.f32 %v1084_v37, %v2546_v47  ;;  %v1128_v53 = vadd.f32 %v1097_v41, %v2547_v49 }
 0x3f9   :  { %v1131_v59 = vmul.f32 0.5, %v1127_v48  ;;  %v1135_v60 = vmul.f32 0.5, %v1128_v53 }
 0x3fb   :  { %1729 = vtanh.f32 %v1131_v59 }
 0x3fc   :  { %1731 = vtanh.f32 %v1135_v60 }
 0x3fd   :  { %v1110_v61 = vpop.f32.mrf.mxu2  ;;  %v1123_v1 = vpop.f32.mrf.mxu3 }
 0x3fe   :  { %v1129_v8 = vadd.f32 %v1110_v61, %v2548_v7  ;;  %v1130_v13 = vadd.f32 %v1123_v1, %v2549_v9  ;;  %v1086_v20 = vpop.f32.mrf.mxu0  ;;  %v1099_v21 = vpop.f32.mrf.mxu1 }
 0x400   :  { %1733 = vtanh.f32 %v1129_v8  ;;  %v1140_v22 = vmul.f32 0.5, %v1130_v13 }
 0x401   :  { %v1730_v26 = vpop.eup %1729 }
 0x402   :  { %v1732_v32 = vpop.eup %1731  ;;  %v1133_v33 = vadd.f32 1.0, %v1730_v26  ;;  %1735 = vtanh.f32 %v1140_v22 }
 0x403   :  { %v1137_v34 = vadd.f32 1.0, %v1732_v32 }
 0x404   :  { %v1134_v38 = vmul.f32 0.5, %v1133_v33 }
 0x405   :  { %v1138_v42 = vmul.f32 0.5, %v1137_v34  ;;  %v1112_v46 = vpop.f32.mrf.mxu2  ;;  %v1125_v50 = vpop.f32.mrf.mxu3 }
 0x406   :  { %v1734_v55 = vpop.eup %1733  ;;  %v2555_v46 = vld [vmem:[#allocation24_spill] sm:$0xff] }
 0x407   :  { %v1144_v2 = vmul.f32 %v1138_v42, %v2452_v43  ;;  %v1145_v3 = vmul.f32 %v1734_v55, %v1134_v38  ;;  %v2554_v38 = vld [vmem:[#allocation23_spill] sm:$0xff] }
 0x408   :  { %v1736_v4 = vpop.eup %1735 }
 0x409   :  { %v1146_v10 = vadd.f32 %v1145_v3, %v1144_v2  ;;  %v1142_v14 = vadd.f32 1.0, %v1736_v4 }
 0x40b   :  { %1737 = vtanh.f32 %v1146_v10  ;;  %v1143_v15 = vmul.f32 0.5, %v1142_v14 }
 0x411   :  { %v1738_v51 = vpop.eup %1737 }
 0x412   :  { %v1148_v16 = vmul.f32 %v1738_v51, %v1143_v15 }
 0x414   :  { %v1149_v27 = vmul.f32 %v1148_v16, %v2277_v56  ;;  %v1158_v39 = vpack.c.bf16 %v1148_v16, %v1148_v16 }
 0x416   :  { %v1150_v6 = vpack.c.bf16 %v1149_v27, %v1149_v27  ;;  %1167 = vmatmul.bf16.vlgmr.msrb.gmra.mxu0 %v1158_v39  ;;  %1180 = vmatmul.bf16.vlgmr.msrb.gmra.mxu1 %v1158_v39 }
 0x417   :  { %1193 = vmatmul.bf16.vlgmr.msrb.gmra.mxu2 %v1158_v39  ;;  %1206 = vmatmul.bf16.vlgmr.msrb.gmra.mxu3 %v1158_v39 }
 0x418   :  { %1604 = vst [vmem:[%s2521_s5 + $0x14] sm:$0xf] %v1150_v6 }
 0x493   :  { %v1168_v62 = vpop.f32.mrf.mxu0  ;;  %v1181_v5 = vpop.f32.mrf.mxu1 }
 0x494   :  { %v1211_v29 = vadd.f32 %v1168_v62, %v2550_v24  ;;  %v1212_v19 = vadd.f32 %v1181_v5, %v2551_v40 }
 0x496   :  { %v1215_v23 = vmul.f32 0.5, %v1211_v29  ;;  %v1219_v25 = vmul.f32 0.5, %v1212_v19 }
 0x498   :  { %1739 = vtanh.f32 %v1215_v23 }
 0x499   :  { %1741 = vtanh.f32 %v1219_v25 }
 0x49a   :  { %v1194_v28 = vpop.f32.mrf.mxu2  ;;  %v1207_v31 = vpop.f32.mrf.mxu3 }
 0x49b   :  { %v1213_v45 = vadd.f32 %v1194_v28, %v2552_v36  ;;  %v1214_v35 = vadd.f32 %v1207_v31, %v2553_v30  ;;  %v1170_v58 = vpop.f32.mrf.mxu0  ;;  %v1183_v17 = vpop.f32.mrf.mxu1 }
 0x49d   :  { %1743 = vtanh.f32 %v1213_v45  ;;  %v1224_v43 = vmul.f32 0.5, %v1214_v35 }
 0x49e   :  { %v1740_v12 = vpop.eup %1739 }
 0x49f   :  { %v1742_v44 = vpop.eup %1741  ;;  %v1217_v54 = vadd.f32 1.0, %v1740_v12  ;;  %1745 = vtanh.f32 %v1224_v43 }
 0x4a0   :  { %v1221_v57 = vadd.f32 1.0, %v1742_v44 }
 0x4a1   :  { %v1218_v52 = vmul.f32 0.5, %v1217_v54 }
 0x4a2   :  { %v1222_v63 = vmul.f32 0.5, %v1221_v57  ;;  %v1196_v11 = vpop.f32.mrf.mxu2  ;;  %v1209_v37 = vpop.f32.mrf.mxu3 }
 0x4a3   :  { %v1744_v41 = vpop.eup %1743 }
 0x4a4   :  { %v1228_v47 = vmul.f32 %v1222_v63, %v1146_v10  ;;  %v1229_v48 = vmul.f32 %v1744_v41, %v1218_v52 }
 0x4a5   :  { %v1746_v49 = vpop.eup %1745 }
 0x4a6   :  { %v1230_v53 = vadd.f32 %v1229_v48, %v1228_v47  ;;  %v1226_v59 = vadd.f32 1.0, %v1746_v49 }
 0x4a8   :  { %1747 = vtanh.f32 %v1230_v53  ;;  %v1227_v60 = vmul.f32 0.5, %v1226_v59 }
 0x4ae   :  { %v1748_v61 = vpop.eup %1747 }
 0x4af   :  { %v1232_v1 = vmul.f32 %v1748_v61, %v1227_v60 }
 0x4b1   :  { %v1233_v7 = vmul.f32 %v1232_v1, %v2277_v56  ;;  %v1242_v8 = vpack.c.bf16 %v1232_v1, %v1232_v1 }
 0x4b3   :  { %v1234_v9 = vpack.c.bf16 %v1233_v7, %v1233_v7  ;;  %1251 = vmatmul.bf16.vlgmr.msra.gmra.mxu0 %v1242_v8  ;;  %1264 = vmatmul.bf16.vlgmr.msra.gmra.mxu1 %v1242_v8 }
 0x4b4   :  { %1277 = vmatmul.bf16.vlgmr.msra.gmra.mxu2 %v1242_v8  ;;  %1290 = vmatmul.bf16.vlgmr.msra.gmra.mxu3 %v1242_v8 }
 0x4b5   :  { %1605 = vst [vmem:[%s2521_s5 + $0x18] sm:$0xf] %v1234_v9 }
 0x530   :  { %v1252_v13 = vpop.f32.mrf.mxu0  ;;  %v1265_v20 = vpop.f32.mrf.mxu1 }
 0x531   :  { %v1295_v21 = vadd.f32 %v1252_v13, %v2257_v18  ;;  %v1296_v22 = vadd.f32 %v1265_v20, %v2259_v0 }
 0x533   :  { %v1299_v26 = vmul.f32 0.5, %v1295_v21  ;;  %v1303_v32 = vmul.f32 0.5, %v1296_v22 }
 0x535   :  { %1749 = vtanh.f32 %v1299_v26 }
 0x536   :  { %1751 = vtanh.f32 %v1303_v32 }
 0x537   :  { %v1278_v33 = vpop.f32.mrf.mxu2  ;;  %v1291_v34 = vpop.f32.mrf.mxu3 }
 0x538   :  { %v1297_v42 = vadd.f32 %v1278_v33, %v2554_v38  ;;  %v1298_v50 = vadd.f32 %v1291_v34, %v2555_v46  ;;  %v1254_v55 = vpop.f32.mrf.mxu0  ;;  %v1267_v2 = vpop.f32.mrf.mxu1 }
 0x53a   :  { %1753 = vtanh.f32 %v1297_v42  ;;  %v1308_v3 = vmul.f32 0.5, %v1298_v50 }
 0x53b   :  { %v1750_v4 = vpop.eup %1749 }
 0x53c   :  { %v1752_v10 = vpop.eup %1751  ;;  %v1301_v14 = vadd.f32 1.0, %v1750_v4  ;;  %1755 = vtanh.f32 %v1308_v3 }
 0x53d   :  { %v1305_v18 = vadd.f32 1.0, %v1752_v10 }
 0x53e   :  { %v1302_v0 = vmul.f32 0.5, %v1301_v14 }
 0x53f   :  { %v1306_v15 = vmul.f32 0.5, %v1305_v18  ;;  %v1280_v51 = vpop.f32.mrf.mxu2  ;;  %v1293_v16 = vpop.f32.mrf.mxu3 }
 0x540   :  { %v1754_v27 = vpop.eup %1753 }
 0x541   :  { %v1312_v39 = vmul.f32 %v1306_v15, %v1230_v53  ;;  %v1313_v6 = vmul.f32 %v1754_v27, %v1302_v0 }
 0x542   :  { %v1756_v62 = vpop.eup %1755 }
 0x543   :  { %v1314_v5 = vadd.f32 %v1313_v6, %v1312_v39  ;;  %v1310_v24 = vadd.f32 1.0, %v1756_v62 }
 0x545   :  { %1757 = vtanh.f32 %v1314_v5  ;;  %v1311_v29 = vmul.f32 0.5, %v1310_v24 }
 0x54b   :  { %v1758_v40 = vpop.eup %1757 }
 0x54c   :  { %v1316_v19 = vmul.f32 %v1758_v40, %v1311_v29 }
 0x54e   :  { %v1317_v23 = vmul.f32 %v1316_v19, %v2277_v56 }
 0x550   :  { %v1318_v25 = vpack.c.bf16 %v1317_v23, %v1317_v23 }
 0x552   :  { %1606 = vst [vmem:[%s2521_s5 + $0x1c] sm:$0xf] %v1318_v25 }
 0x553   :  { %1327 = vsyncpa [#allocation6], 1 }

</bundles_post_ra>
